<compile_context>
chip_gen: v6e
topology: v6e:2x2x1
jax: 0.10.0
libtpu: 0.0.40
codegen_flags: <defaults>
</compile_context>

<pallas_src>
import functools

import jax
import jax.numpy as jnp
from jax import lax
from jax.experimental import pallas as pl
from jax.experimental.pallas import tpu as pltpu

EPS = 1e-12


def _pick_seq_tile(seq_len, max_tile=256):
    """Largest row tile <= max_tile that is a multiple of 8 and divides seq_len
    (falls back to the full sequence, which always satisfies the block-shape rule)."""
    if seq_len <= max_tile:
        return seq_len
    for ts in range(max_tile - (max_tile % 8), 0, -8):
        if seq_len % ts == 0:
            return ts
    return seq_len


def _embeddings_kernel(ids_ref, word_tbl_ref, pos_ref, *args,
                       seq_len, seq_tile, chunk, vocab, has_decoder, table_resident):
    if has_decoder:
        dec_ref, gamma_ref, beta_ref, o_ref = args[:4]
        scratch = args[4:]
    else:
        dec_ref = None
        gamma_ref, beta_ref, o_ref = args[:3]
        scratch = args[3:]
    if table_resident:
        (wbuf_ref,) = scratch
        sem_ref = None
    else:
        wbuf_ref, sem_ref = scratch

    j = pl.program_id(0)           # sequence-tile index (outer grid axis)
    b = pl.program_id(1)           # batch index (inner grid axis -> pos block reused)
    ids_base = b * seq_len + j * seq_tile   # ids were flattened to [B*S]

    gamma = gamma_ref[...].astype(jnp.float32)
    beta = beta_ref[...].astype(jnp.float32)

    def ln_chunk(row0, nrows):
        # row0 / nrows are static -> zero-cost ref views.
        h = wbuf_ref[pl.ds(row0, nrows), :].astype(jnp.float32) \
            + pos_ref[pl.ds(row0, nrows), :].astype(jnp.float32)
        if has_decoder:
            h = h + dec_ref[pl.ds(row0, nrows), :].astype(jnp.float32)
        # TF-style LayerNorm (eps inside the sqrt), biased variance over hidden dim.
        u = jnp.mean(h, axis=-1, keepdims=True)
        d = h - u
        var = jnp.mean(d * d, axis=-1, keepdims=True)
        scale = gamma * lax.rsqrt(var + EPS)      # fold gamma into the rsqrt scale
        # Dropout: eval-mode identity.
        # TODO(synk): training-mode dropout (pltpu.prng_random_bits mask) not implemented.
        o_ref[pl.ds(row0, nrows), :] = (d * scale + beta).astype(o_ref.dtype)

    if table_resident:
        # Whole table is resident in VMEM: gather rows with cheap on-chip dynamic loads.
        def gather_body(r, carry):
            tok = ids_ref[ids_base + r]
            tok = jnp.minimum(jnp.maximum(tok, 0), vocab - 1)
            wbuf_ref[pl.ds(r, 1), :] = word_tbl_ref[pl.ds(tok, 1), :]
            return carry
        lax.fori_loop(0, seq_tile, gather_body, 0, unroll=min(8, seq_tile))
        ln_chunk(0, seq_tile)
        return

    # HBM-DMA gather path: sub-chunk pipeline so row DMAs of chunk c+1 overlap the
    # LayerNorm/store of chunk c. Only 2 DMA semaphores (one per in-flight chunk).
    n_chunks = seq_tile // chunk

    def start_chunk(c, slot):
        row0 = c * chunk
        def body(r, carry):
            tok = ids_ref[ids_base + row0 + r]
            tok = jnp.minimum(jnp.maximum(tok, 0), vocab - 1)
            pltpu.make_async_copy(word_tbl_ref.at[pl.ds(tok, 1), :],
                                  wbuf_ref.at[pl.ds(row0 + r, 1), :],
                                  sem_ref.at[slot]).start()
            return carry
        lax.fori_loop(0, chunk, body, 0, unroll=min(8, chunk))

    def wait_chunk(c, slot):
        row0 = c * chunk
        def body(r, carry):
            # Wait descriptors only need matching shapes + semaphore.
            pltpu.make_async_copy(word_tbl_ref.at[pl.ds(0, 1), :],
                                  wbuf_ref.at[pl.ds(row0 + r, 1), :],
                                  sem_ref.at[slot]).wait()
            return carry
        lax.fori_loop(0, chunk, body, 0, unroll=min(8, chunk))

    start_chunk(0, 0)
    for c in range(n_chunks):                 # n_chunks <= 4 (static Python unroll)
        if c + 1 < n_chunks:
            start_chunk(c + 1, (c + 1) % 2)   # prefetch next chunk before touching current
        wait_chunk(c, c % 2)
        ln_chunk(c * chunk, chunk)


def bert_decoder_embeddings(input_ids, word_table, pos_table, gamma, beta,
                            input_decoder=None, *, max_seq_tile=256,
                            out_dtype=None, word_table_in_vmem=None):
    """input_ids: [B, S] int; word_table: [V, H]; pos_table: [P, H] (P >= S);
    gamma, beta: [H]; input_decoder: optional [B, S, H]."""
    B, S = input_ids.shape
    V, H = word_table.shape
    P = pos_table.shape[0]
    assert P >= S, "max_target_embeddings must cover the sequence length"
    out_dtype = word_table.dtype if out_dtype is None else out_dtype
    has_decoder = input_decoder is not None

    ts = _pick_seq_tile(S, max_seq_tile)
    n_seq = S // ts
    grid = (n_seq, B)                                   # seq outer, batch inner -> pos reuse

    # Sub-chunking for gather/compute overlap (LayerNorm is per-row, chunks independent).
    n_chunks = max(1, min(4, ts // 8))
    while ts % n_chunks:
        n_chunks -= 1
    chunk = ts // n_chunks

    itemsize = jnp.dtype(word_table.dtype).itemsize
    pos_itemsize = jnp.dtype(pos_table.dtype).itemsize
    out_itemsize = jnp.dtype(out_dtype).itemsize
    dec_itemsize = jnp.dtype(input_decoder.dtype).itemsize if has_decoder else 0
    table_bytes = V * H * itemsize

    try:
        vmem_cap = int(pltpu.get_tpu_info().vmem_capacity_bytes)
    except Exception:
        vmem_cap = 64 * 1024 * 1024                     # conservative fallback (v7x-sized)
    if word_table_in_vmem is None:
        # Resident only with comfortable headroom: yes for bf16 BERT tables on
        # v5e/v6e (128 MiB VMEM), no on v7x (64 MiB).
        word_table_in_vmem = table_bytes <= int(0.4 * vmem_cap)

    # Position rows used are exactly arange(S) -> contiguous blocks of the full table;
    # only fall back to a slice if the tile would violate the (8,128) block rule.
    pos_arg = pos_table if ts % 8 == 0 else pos_table[:S]

    gamma2d = gamma.reshape(1, H)
    beta2d = beta.reshape(1, H)

    if word_table_in_vmem:
        table_spec = pl.BlockSpec(memory_space=pltpu.MemorySpace.VMEM)  # whole table, single copy
    else:
        table_spec = pl.BlockSpec(memory_space=pl.ANY)                  # raw HBM, manual DMA gather

    in_specs = [
        table_spec,
        pl.BlockSpec((ts, H), lambda j, b, ids: (j, 0)),                # position rows (reused over batch)
    ]
    args = [word_table, pos_arg]
    if has_decoder:
        in_specs.append(pl.BlockSpec((None, ts, H), lambda j, b, ids: (b, j, 0)))
        args.append(input_decoder)
    in_specs += [
        pl.BlockSpec((1, H), lambda j, b, ids: (0, 0)),                 # LN gamma (resident)
        pl.BlockSpec((1, H), lambda j, b, ids: (0, 0)),                 # LN beta  (resident)
    ]
    args += [gamma2d, beta2d]

    scratch_shapes = [pltpu.VMEM((ts, H), word_table.dtype)]            # gathered word-emb rows
    if not word_table_in_vmem:
        scratch_shapes.append(pltpu.SemaphoreType.DMA((2,)))            # 2-slot chunk pipeline

    # VMEM footprint (double-buffered pipelined blocks + scratch + f32 temporaries).
    blk = ts * H
    footprint = (blk * itemsize                       # wbuf scratch
                 + 2 * blk * pos_itemsize             # pos blocks
                 + 2 * blk * out_itemsize             # out blocks
                 + (2 * blk * dec_itemsize if has_decoder else 0)
                 + 4 * H * itemsize                   # gamma/beta
                 + 4 * blk * 4)                       # f32 temporaries headroom
    if word_table_in_vmem:
        footprint += table_bytes
    vmem_limit = int(min(max(footprint + (8 << 20), 16 << 20), vmem_cap - (2 << 20)))

    n_dec = 1 if has_decoder else 0
    cost = pl.CostEstimate(
        flops=10 * B * S * H,
        transcendentals=B * S,                        # one rsqrt per row
        bytes_accessed=int(4 * B * S
                           + B * S * H * itemsize     # gathered word-emb rows
                           + S * H * pos_itemsize     # pos fetched once (reused over batch)
                           + n_dec * B * S * H * dec_itemsize
                           + B * S * H * out_itemsize
                           + 2 * H * 4),
    )

    kernel = functools.partial(
        _embeddings_kernel,
        seq_len=S, seq_tile=ts, chunk=chunk, vocab=V,
        has_decoder=has_decoder, table_resident=word_table_in_vmem)

    out = pl.pallas_call(
        kernel,
        out_shape=jax.ShapeDtypeStruct((B, S, H), out_dtype),
        grid_spec=pltpu.PrefetchScalarGridSpec(
            num_scalar_prefetch=1,                    # flattened token ids -> SMEM
            grid=grid,
            in_specs=in_specs,
            out_specs=pl.BlockSpec((None, ts, H), lambda j, b, ids: (b, j, 0)),
            scratch_shapes=scratch_shapes,
        ),
        compiler_params=pltpu.CompilerParams(
            # seq tiles shardable across megacore; batch kept sequential per core so the
            # constant pos block index is actually reused between consecutive steps.
            dimension_semantics=("parallel", "arbitrary"),
            vmem_limit_bytes=vmem_limit,
        ),
        cost_estimate=cost,
    )(input_ids.reshape(-1).astype(jnp.int32), *args)
    return out


def reference(input_ids, word_table, pos_table, gamma, beta, input_decoder=None):
    B, S = input_ids.shape
    emb = jnp.take(word_table, input_ids, axis=0) + pos_table[:S][None, :, :]
    if input_decoder is not None:
        emb = emb + input_decoder
    u = jnp.mean(emb, axis=-1, keepdims=True)
    s = jnp.mean((emb - u) ** 2, axis=-1, keepdims=True)
    xn = (emb - u) / jnp.sqrt(s + EPS)
    return gamma * xn + beta


if __name__ == "__main__":
    # Small config: batch=2, seq=16, hidden=32, decoder_vocab_size=50, max_target_embeddings=32.
    # seq=16 -> two 8-row chunks, so the overlapped-gather pipeline path is exercised.
    B, S, H, V, P = 2, 16, 32, 50, 32
    key = jax.random.PRNGKey(0)
    k1, k2, k3, k4, k5, k6 = jax.random.split(key, 6)

    input_ids = jax.random.randint(k1, (B, S), 0, V, dtype=jnp.int32)
    word_table = jax.random.normal(k2, (V, H), dtype=jnp.float32) * 0.02
    pos_table = jax.random.normal(k3, (P, H), dtype=jnp.float32) * 0.02
    gamma = 1.0 + 0.1 * jax.random.normal(k4, (H,), dtype=jnp.float32)  # DecoderBertLayerNorm.weight
    beta = 0.1 * jax.random.normal(k5, (H,), dtype=jnp.float32)         # DecoderBertLayerNorm.bias
    input_decoder = jax.random.normal(k6, (B, S, H), dtype=jnp.float32) * 0.05

    ref_with_dec = reference(input_ids, word_table, pos_table, gamma, beta, input_decoder)
    ref_no_dec = reference(input_ids, word_table, pos_table, gamma, beta)

    # Exercise both gather paths: HBM-DMA (large-table / v7x path) and VMEM-resident table.
    for resident in (False, True):
        out1 = jax.block_until_ready(bert_decoder_embeddings(
            input_ids, word_table, pos_table, gamma, beta, input_decoder,
            word_table_in_vmem=resident))
        assert out1.shape == (B, S, H)
        assert jnp.allclose(out1, ref_with_dec, atol=1e-4, rtol=1e-4)

        out2 = jax.block_until_ready(bert_decoder_embeddings(
            input_ids, word_table, pos_table, gamma, beta,
            word_table_in_vmem=resident))
        assert jnp.allclose(out2, ref_no_dec, atol=1e-4, rtol=1e-4)

    print("KERNEL_OK")
</pallas_src>

<mosaic_0001>
module attributes {stable_mosaic.version = 11 : i64} {
  func.func @_embeddings_kernel(%arg0: i32, %arg1: i32, %arg2: memref<32xi32, #tpu.memory_space<smem>>, %arg3: memref<50x32xf32, #tpu.memory_space<any>>, %arg4: memref<16x32xf32, #tpu.memory_space<vmem>>, %arg5: memref<1x16x32xf32, #tpu.memory_space<vmem>>, %arg6: memref<1x32xf32, #tpu.memory_space<vmem>>, %arg7: memref<1x32xf32, #tpu.memory_space<vmem>>, %arg8: memref<1x16x32xf32, #tpu.memory_space<vmem>>, %arg9: memref<16x32xf32, #tpu.memory_space<vmem>>, %arg10: memref<2x!tpu.dma_semaphore, #tpu.memory_space<semaphore_mem>>) attributes {dimension_semantics = [#tpu.dimension_semantics<parallel>, #tpu.dimension_semantics<arbitrary>], iteration_bounds = array<i64: 1, 2>, scalar_prefetch = 1 : i64, scratch_operands = 2 : i64, tpu.core_type = #tpu.core_type<tc>, window_params = [{}, {transform_indices = @transform_1, window_bounds = array<i64: 16, 32>}, {transform_indices = @transform_2, window_bounds = array<i64: 1, 16, 32>}, {pipeline_mode = #tpu.pipeline_mode<synchronous>, transform_indices = @transform_3, window_bounds = array<i64: 1, 32>}, {pipeline_mode = #tpu.pipeline_mode<synchronous>, transform_indices = @transform_4, window_bounds = array<i64: 1, 32>}, {transform_indices = @transform_5, window_bounds = array<i64: 1, 16, 32>}]} {
    %c16_i32 = arith.constant 16 : i32
    %0 = arith.muli %arg1, %c16_i32 : i32
    %c16_i32_0 = arith.constant 16 : i32
    %1 = arith.muli %arg0, %c16_i32_0 : i32
    %2 = arith.addi %0, %1 : i32
    %c0 = arith.constant 0 : index
    %c0_1 = arith.constant 0 : index
    %3 = vector.load %arg6[%c0, %c0_1] : memref<1x32xf32, #tpu.memory_space<vmem>>, vector<1x32xf32>
    %c0_2 = arith.constant 0 : index
    %c0_3 = arith.constant 0 : index
    %4 = vector.load %arg7[%c0_2, %c0_3] : memref<1x32xf32, #tpu.memory_space<vmem>>, vector<1x32xf32>
    %c0_i32 = arith.constant 0 : i32
    %c0_i32_4 = arith.constant 0 : i32
    %5 = arith.addi %2, %c0_i32_4 : i32
    %6 = arith.addi %5, %c0_i32 : i32
    %7 = arith.index_cast %6 : i32 to index
    %8 = memref.load %arg2[%7] : memref<32xi32, #tpu.memory_space<smem>>
    %c0_i32_5 = arith.constant 0 : i32
    %9 = arith.maxsi %8, %c0_i32_5 : i32
    %c49_i32 = arith.constant 49 : i32
    %10 = arith.minsi %9, %c49_i32 : i32
    %c0_i32_6 = arith.constant 0 : i32
    %11 = arith.addi %c0_i32_6, %c0_i32 : i32
    %c0_i32_7 = arith.constant 0 : i32
    %c0_i32_8 = arith.constant 0 : i32
    %12 = tpu.memref_slice %arg3[%10, %c0_i32_8] : memref<50x32xf32, #tpu.memory_space<any>> -> memref<1x32xf32, #tpu.memory_space<any>>
    %c0_i32_9 = arith.constant 0 : i32
    %13 = tpu.memref_slice %arg9[%11, %c0_i32_9] : memref<16x32xf32, #tpu.memory_space<vmem>> -> memref<1x32xf32, #tpu.memory_space<vmem>>
    %14 = tpu.memref_slice %arg10[%c0_i32_7] : memref<2x!tpu.dma_semaphore, #tpu.memory_space<semaphore_mem>> -> memref<1x!tpu.dma_semaphore, #tpu.memory_space<semaphore_mem>>
    %15 = tpu.memref_squeeze %14 : memref<1x!tpu.dma_semaphore, #tpu.memory_space<semaphore_mem>> -> memref<!tpu.dma_semaphore, #tpu.memory_space<semaphore_mem>>
    tpu.enqueue_dma source(%12 : memref<1x32xf32, #tpu.memory_space<any>>) target(%13 : memref<1x32xf32, #tpu.memory_space<vmem>>) target_semaphore(%15 : memref<!tpu.dma_semaphore, #tpu.memory_space<semaphore_mem>>)
    %c1_i32 = arith.constant 1 : i32
    %c0_i32_10 = arith.constant 0 : i32
    %16 = arith.addi %2, %c0_i32_10 : i32
    %17 = arith.addi %16, %c1_i32 : i32
    %18 = arith.index_cast %17 : i32 to index
    %19 = memref.load %arg2[%18] : memref<32xi32, #tpu.memory_space<smem>>
    %c0_i32_11 = arith.constant 0 : i32
    %20 = arith.maxsi %19, %c0_i32_11 : i32
    %c49_i32_12 = arith.constant 49 : i32
    %21 = arith.minsi %20, %c49_i32_12 : i32
    %c0_i32_13 = arith.constant 0 : i32
    %22 = arith.addi %c0_i32_13, %c1_i32 : i32
    %c0_i32_14 = arith.constant 0 : i32
    %c0_i32_15 = arith.constant 0 : i32
    %23 = tpu.memref_slice %arg3[%21, %c0_i32_15] : memref<50x32xf32, #tpu.memory_space<any>> -> memref<1x32xf32, #tpu.memory_space<any>>
    %c0_i32_16 = arith.constant 0 : i32
    %24 = tpu.memref_slice %arg9[%22, %c0_i32_16] : memref<16x32xf32, #tpu.memory_space<vmem>> -> memref<1x32xf32, #tpu.memory_space<vmem>>
    %25 = tpu.memref_slice %arg10[%c0_i32_14] : memref<2x!tpu.dma_semaphore, #tpu.memory_space<semaphore_mem>> -> memref<1x!tpu.dma_semaphore, #tpu.memory_space<semaphore_mem>>
    %26 = tpu.memref_squeeze %25 : memref<1x!tpu.dma_semaphore, #tpu.memory_space<semaphore_mem>> -> memref<!tpu.dma_semaphore, #tpu.memory_space<semaphore_mem>>
    tpu.enqueue_dma source(%23 : memref<1x32xf32, #tpu.memory_space<any>>) target(%24 : memref<1x32xf32, #tpu.memory_space<vmem>>) target_semaphore(%26 : memref<!tpu.dma_semaphore, #tpu.memory_space<semaphore_mem>>)
    %c2_i32 = arith.constant 2 : i32
    %c0_i32_17 = arith.constant 0 : i32
    %27 = arith.addi %2, %c0_i32_17 : i32
    %28 = arith.addi %27, %c2_i32 : i32
    %29 = arith.index_cast %28 : i32 to index
    %30 = memref.load %arg2[%29] : memref<32xi32, #tpu.memory_space<smem>>
    %c0_i32_18 = arith.constant 0 : i32
    %31 = arith.maxsi %30, %c0_i32_18 : i32
    %c49_i32_19 = arith.constant 49 : i32
    %32 = arith.minsi %31, %c49_i32_19 : i32
    %c0_i32_20 = arith.constant 0 : i32
    %33 = arith.addi %c0_i32_20, %c2_i32 : i32
    %c0_i32_21 = arith.constant 0 : i32
    %c0_i32_22 = arith.constant 0 : i32
    %34 = tpu.memref_slice %arg3[%32, %c0_i32_22] : memref<50x32xf32, #tpu.memory_space<any>> -> memref<1x32xf32, #tpu.memory_space<any>>
    %c0_i32_23 = arith.constant 0 : i32
    %35 = tpu.memref_slice %arg9[%33, %c0_i32_23] : memref<16x32xf32, #tpu.memory_space<vmem>> -> memref<1x32xf32, #tpu.memory_space<vmem>>
    %36 = tpu.memref_slice %arg10[%c0_i32_21] : memref<2x!tpu.dma_semaphore, #tpu.memory_space<semaphore_mem>> -> memref<1x!tpu.dma_semaphore, #tpu.memory_space<semaphore_mem>>
    %37 = tpu.memref_squeeze %36 : memref<1x!tpu.dma_semaphore, #tpu.memory_space<semaphore_mem>> -> memref<!tpu.dma_semaphore, #tpu.memory_space<semaphore_mem>>
    tpu.enqueue_dma source(%34 : memref<1x32xf32, #tpu.memory_space<any>>) target(%35 : memref<1x32xf32, #tpu.memory_space<vmem>>) target_semaphore(%37 : memref<!tpu.dma_semaphore, #tpu.memory_space<semaphore_mem>>)
    %c3_i32 = arith.constant 3 : i32
    %c0_i32_24 = arith.constant 0 : i32
    %38 = arith.addi %2, %c0_i32_24 : i32
    %39 = arith.addi %38, %c3_i32 : i32
    %40 = arith.index_cast %39 : i32 to index
    %41 = memref.load %arg2[%40] : memref<32xi32, #tpu.memory_space<smem>>
    %c0_i32_25 = arith.constant 0 : i32
    %42 = arith.maxsi %41, %c0_i32_25 : i32
    %c49_i32_26 = arith.constant 49 : i32
    %43 = arith.minsi %42, %c49_i32_26 : i32
    %c0_i32_27 = arith.constant 0 : i32
    %44 = arith.addi %c0_i32_27, %c3_i32 : i32
    %c0_i32_28 = arith.constant 0 : i32
    %c0_i32_29 = arith.constant 0 : i32
    %45 = tpu.memref_slice %arg3[%43, %c0_i32_29] : memref<50x32xf32, #tpu.memory_space<any>> -> memref<1x32xf32, #tpu.memory_space<any>>
    %c0_i32_30 = arith.constant 0 : i32
    %46 = tpu.memref_slice %arg9[%44, %c0_i32_30] : memref<16x32xf32, #tpu.memory_space<vmem>> -> memref<1x32xf32, #tpu.memory_space<vmem>>
    %47 = tpu.memref_slice %arg10[%c0_i32_28] : memref<2x!tpu.dma_semaphore, #tpu.memory_space<semaphore_mem>> -> memref<1x!tpu.dma_semaphore, #tpu.memory_space<semaphore_mem>>
    %48 = tpu.memref_squeeze %47 : memref<1x!tpu.dma_semaphore, #tpu.memory_space<semaphore_mem>> -> memref<!tpu.dma_semaphore, #tpu.memory_space<semaphore_mem>>
    tpu.enqueue_dma source(%45 : memref<1x32xf32, #tpu.memory_space<any>>) target(%46 : memref<1x32xf32, #tpu.memory_space<vmem>>) target_semaphore(%48 : memref<!tpu.dma_semaphore, #tpu.memory_space<semaphore_mem>>)
    %c4_i32 = arith.constant 4 : i32
    %c0_i32_31 = arith.constant 0 : i32
    %49 = arith.addi %2, %c0_i32_31 : i32
    %50 = arith.addi %49, %c4_i32 : i32
    %51 = arith.index_cast %50 : i32 to index
    %52 = memref.load %arg2[%51] : memref<32xi32, #tpu.memory_space<smem>>
    %c0_i32_32 = arith.constant 0 : i32
    %53 = arith.maxsi %52, %c0_i32_32 : i32
    %c49_i32_33 = arith.constant 49 : i32
    %54 = arith.minsi %53, %c49_i32_33 : i32
    %c0_i32_34 = arith.constant 0 : i32
    %55 = arith.addi %c0_i32_34, %c4_i32 : i32
    %c0_i32_35 = arith.constant 0 : i32
    %c0_i32_36 = arith.constant 0 : i32
    %56 = tpu.memref_slice %arg3[%54, %c0_i32_36] : memref<50x32xf32, #tpu.memory_space<any>> -> memref<1x32xf32, #tpu.memory_space<any>>
    %c0_i32_37 = arith.constant 0 : i32
    %57 = tpu.memref_slice %arg9[%55, %c0_i32_37] : memref<16x32xf32, #tpu.memory_space<vmem>> -> memref<1x32xf32, #tpu.memory_space<vmem>>
    %58 = tpu.memref_slice %arg10[%c0_i32_35] : memref<2x!tpu.dma_semaphore, #tpu.memory_space<semaphore_mem>> -> memref<1x!tpu.dma_semaphore, #tpu.memory_space<semaphore_mem>>
    %59 = tpu.memref_squeeze %58 : memref<1x!tpu.dma_semaphore, #tpu.memory_space<semaphore_mem>> -> memref<!tpu.dma_semaphore, #tpu.memory_space<semaphore_mem>>
    tpu.enqueue_dma source(%56 : memref<1x32xf32, #tpu.memory_space<any>>) target(%57 : memref<1x32xf32, #tpu.memory_space<vmem>>) target_semaphore(%59 : memref<!tpu.dma_semaphore, #tpu.memory_space<semaphore_mem>>)
    %c5_i32 = arith.constant 5 : i32
    %c0_i32_38 = arith.constant 0 : i32
    %60 = arith.addi %2, %c0_i32_38 : i32
    %61 = arith.addi %60, %c5_i32 : i32
    %62 = arith.index_cast %61 : i32 to index
    %63 = memref.load %arg2[%62] : memref<32xi32, #tpu.memory_space<smem>>
    %c0_i32_39 = arith.constant 0 : i32
    %64 = arith.maxsi %63, %c0_i32_39 : i32
    %c49_i32_40 = arith.constant 49 : i32
    %65 = arith.minsi %64, %c49_i32_40 : i32
    %c0_i32_41 = arith.constant 0 : i32
    %66 = arith.addi %c0_i32_41, %c5_i32 : i32
    %c0_i32_42 = arith.constant 0 : i32
    %c0_i32_43 = arith.constant 0 : i32
    %67 = tpu.memref_slice %arg3[%65, %c0_i32_43] : memref<50x32xf32, #tpu.memory_space<any>> -> memref<1x32xf32, #tpu.memory_space<any>>
    %c0_i32_44 = arith.constant 0 : i32
    %68 = tpu.memref_slice %arg9[%66, %c0_i32_44] : memref<16x32xf32, #tpu.memory_space<vmem>> -> memref<1x32xf32, #tpu.memory_space<vmem>>
    %69 = tpu.memref_slice %arg10[%c0_i32_42] : memref<2x!tpu.dma_semaphore, #tpu.memory_space<semaphore_mem>> -> memref<1x!tpu.dma_semaphore, #tpu.memory_space<semaphore_mem>>
    %70 = tpu.memref_squeeze %69 : memref<1x!tpu.dma_semaphore, #tpu.memory_space<semaphore_mem>> -> memref<!tpu.dma_semaphore, #tpu.memory_space<semaphore_mem>>
    tpu.enqueue_dma source(%67 : memref<1x32xf32, #tpu.memory_space<any>>) target(%68 : memref<1x32xf32, #tpu.memory_space<vmem>>) target_semaphore(%70 : memref<!tpu.dma_semaphore, #tpu.memory_space<semaphore_mem>>)
    %c6_i32 = arith.constant 6 : i32
    %c0_i32_45 = arith.constant 0 : i32
    %71 = arith.addi %2, %c0_i32_45 : i32
    %72 = arith.addi %71, %c6_i32 : i32
    %73 = arith.index_cast %72 : i32 to index
    %74 = memref.load %arg2[%73] : memref<32xi32, #tpu.memory_space<smem>>
    %c0_i32_46 = arith.constant 0 : i32
    %75 = arith.maxsi %74, %c0_i32_46 : i32
    %c49_i32_47 = arith.constant 49 : i32
    %76 = arith.minsi %75, %c49_i32_47 : i32
    %c0_i32_48 = arith.constant 0 : i32
    %77 = arith.addi %c0_i32_48, %c6_i32 : i32
    %c0_i32_49 = arith.constant 0 : i32
    %c0_i32_50 = arith.constant 0 : i32
    %78 = tpu.memref_slice %arg3[%76, %c0_i32_50] : memref<50x32xf32, #tpu.memory_space<any>> -> memref<1x32xf32, #tpu.memory_space<any>>
    %c0_i32_51 = arith.constant 0 : i32
    %79 = tpu.memref_slice %arg9[%77, %c0_i32_51] : memref<16x32xf32, #tpu.memory_space<vmem>> -> memref<1x32xf32, #tpu.memory_space<vmem>>
    %80 = tpu.memref_slice %arg10[%c0_i32_49] : memref<2x!tpu.dma_semaphore, #tpu.memory_space<semaphore_mem>> -> memref<1x!tpu.dma_semaphore, #tpu.memory_space<semaphore_mem>>
    %81 = tpu.memref_squeeze %80 : memref<1x!tpu.dma_semaphore, #tpu.memory_space<semaphore_mem>> -> memref<!tpu.dma_semaphore, #tpu.memory_space<semaphore_mem>>
    tpu.enqueue_dma source(%78 : memref<1x32xf32, #tpu.memory_space<any>>) target(%79 : memref<1x32xf32, #tpu.memory_space<vmem>>) target_semaphore(%81 : memref<!tpu.dma_semaphore, #tpu.memory_space<semaphore_mem>>)
    %c7_i32 = arith.constant 7 : i32
    %c0_i32_52 = arith.constant 0 : i32
    %82 = arith.addi %2, %c0_i32_52 : i32
    %83 = arith.addi %82, %c7_i32 : i32
    %84 = arith.index_cast %83 : i32 to index
    %85 = memref.load %arg2[%84] : memref<32xi32, #tpu.memory_space<smem>>
    %c0_i32_53 = arith.constant 0 : i32
    %86 = arith.maxsi %85, %c0_i32_53 : i32
    %c49_i32_54 = arith.constant 49 : i32
    %87 = arith.minsi %86, %c49_i32_54 : i32
    %c0_i32_55 = arith.constant 0 : i32
    %88 = arith.addi %c0_i32_55, %c7_i32 : i32
    %c0_i32_56 = arith.constant 0 : i32
    %c0_i32_57 = arith.constant 0 : i32
    %89 = tpu.memref_slice %arg3[%87, %c0_i32_57] : memref<50x32xf32, #tpu.memory_space<any>> -> memref<1x32xf32, #tpu.memory_space<any>>
    %c0_i32_58 = arith.constant 0 : i32
    %90 = tpu.memref_slice %arg9[%88, %c0_i32_58] : memref<16x32xf32, #tpu.memory_space<vmem>> -> memref<1x32xf32, #tpu.memory_space<vmem>>
    %91 = tpu.memref_slice %arg10[%c0_i32_56] : memref<2x!tpu.dma_semaphore, #tpu.memory_space<semaphore_mem>> -> memref<1x!tpu.dma_semaphore, #tpu.memory_space<semaphore_mem>>
    %92 = tpu.memref_squeeze %91 : memref<1x!tpu.dma_semaphore, #tpu.memory_space<semaphore_mem>> -> memref<!tpu.dma_semaphore, #tpu.memory_space<semaphore_mem>>
    tpu.enqueue_dma source(%89 : memref<1x32xf32, #tpu.memory_space<any>>) target(%90 : memref<1x32xf32, #tpu.memory_space<vmem>>) target_semaphore(%92 : memref<!tpu.dma_semaphore, #tpu.memory_space<semaphore_mem>>)
    %c8_i32 = arith.constant 8 : i32
    %c0_i32_59 = arith.constant 0 : i32
    %c8_i32_60 = arith.constant 8 : i32
    %93 = arith.addi %2, %c8_i32_60 : i32
    %94 = arith.addi %93, %c0_i32_59 : i32
    %95 = arith.index_cast %94 : i32 to index
    %96 = memref.load %arg2[%95] : memref<32xi32, #tpu.memory_space<smem>>
    %c0_i32_61 = arith.constant 0 : i32
    %97 = arith.maxsi %96, %c0_i32_61 : i32
    %c49_i32_62 = arith.constant 49 : i32
    %98 = arith.minsi %97, %c49_i32_62 : i32
    %c8_i32_63 = arith.constant 8 : i32
    %99 = arith.addi %c8_i32_63, %c0_i32_59 : i32
    %c1_i32_64 = arith.constant 1 : i32
    %c0_i32_65 = arith.constant 0 : i32
    %100 = tpu.memref_slice %arg3[%98, %c0_i32_65] : memref<50x32xf32, #tpu.memory_space<any>> -> memref<1x32xf32, #tpu.memory_space<any>>
    %c0_i32_66 = arith.constant 0 : i32
    %101 = tpu.memref_slice %arg9[%99, %c0_i32_66] : memref<16x32xf32, #tpu.memory_space<vmem>> -> memref<1x32xf32, #tpu.memory_space<vmem>>
    %102 = tpu.memref_slice %arg10[%c1_i32_64] : memref<2x!tpu.dma_semaphore, #tpu.memory_space<semaphore_mem>> -> memref<1x!tpu.dma_semaphore, #tpu.memory_space<semaphore_mem>>
    %103 = tpu.memref_squeeze %102 : memref<1x!tpu.dma_semaphore, #tpu.memory_space<semaphore_mem>> -> memref<!tpu.dma_semaphore, #tpu.memory_space<semaphore_mem>>
    tpu.enqueue_dma source(%100 : memref<1x32xf32, #tpu.memory_space<any>>) target(%101 : memref<1x32xf32, #tpu.memory_space<vmem>>) target_semaphore(%103 : memref<!tpu.dma_semaphore, #tpu.memory_space<semaphore_mem>>)
    %c1_i32_67 = arith.constant 1 : i32
    %c8_i32_68 = arith.constant 8 : i32
    %104 = arith.addi %2, %c8_i32_68 : i32
    %105 = arith.addi %104, %c1_i32_67 : i32
    %106 = arith.index_cast %105 : i32 to index
    %107 = memref.load %arg2[%106] : memref<32xi32, #tpu.memory_space<smem>>
    %c0_i32_69 = arith.constant 0 : i32
    %108 = arith.maxsi %107, %c0_i32_69 : i32
    %c49_i32_70 = arith.constant 49 : i32
    %109 = arith.minsi %108, %c49_i32_70 : i32
    %c8_i32_71 = arith.constant 8 : i32
    %110 = arith.addi %c8_i32_71, %c1_i32_67 : i32
    %c1_i32_72 = arith.constant 1 : i32
    %c0_i32_73 = arith.constant 0 : i32
    %111 = tpu.memref_slice %arg3[%109, %c0_i32_73] : memref<50x32xf32, #tpu.memory_space<any>> -> memref<1x32xf32, #tpu.memory_space<any>>
    %c0_i32_74 = arith.constant 0 : i32
    %112 = tpu.memref_slice %arg9[%110, %c0_i32_74] : memref<16x32xf32, #tpu.memory_space<vmem>> -> memref<1x32xf32, #tpu.memory_space<vmem>>
    %113 = tpu.memref_slice %arg10[%c1_i32_72] : memref<2x!tpu.dma_semaphore, #tpu.memory_space<semaphore_mem>> -> memref<1x!tpu.dma_semaphore, #tpu.memory_space<semaphore_mem>>
    %114 = tpu.memref_squeeze %113 : memref<1x!tpu.dma_semaphore, #tpu.memory_space<semaphore_mem>> -> memref<!tpu.dma_semaphore, #tpu.memory_space<semaphore_mem>>
    tpu.enqueue_dma source(%111 : memref<1x32xf32, #tpu.memory_space<any>>) target(%112 : memref<1x32xf32, #tpu.memory_space<vmem>>) target_semaphore(%114 : memref<!tpu.dma_semaphore, #tpu.memory_space<semaphore_mem>>)
    %c2_i32_75 = arith.constant 2 : i32
    %c8_i32_76 = arith.constant 8 : i32
    %115 = arith.addi %2, %c8_i32_76 : i32
    %116 = arith.addi %115, %c2_i32_75 : i32
    %117 = arith.index_cast %116 : i32 to index
    %118 = memref.load %arg2[%117] : memref<32xi32, #tpu.memory_space<smem>>
    %c0_i32_77 = arith.constant 0 : i32
    %119 = arith.maxsi %118, %c0_i32_77 : i32
    %c49_i32_78 = arith.constant 49 : i32
    %120 = arith.minsi %119, %c49_i32_78 : i32
    %c8_i32_79 = arith.constant 8 : i32
    %121 = arith.addi %c8_i32_79, %c2_i32_75 : i32
    %c1_i32_80 = arith.constant 1 : i32
    %c0_i32_81 = arith.constant 0 : i32
    %122 = tpu.memref_slice %arg3[%120, %c0_i32_81] : memref<50x32xf32, #tpu.memory_space<any>> -> memref<1x32xf32, #tpu.memory_space<any>>
    %c0_i32_82 = arith.constant 0 : i32
    %123 = tpu.memref_slice %arg9[%121, %c0_i32_82] : memref<16x32xf32, #tpu.memory_space<vmem>> -> memref<1x32xf32, #tpu.memory_space<vmem>>
    %124 = tpu.memref_slice %arg10[%c1_i32_80] : memref<2x!tpu.dma_semaphore, #tpu.memory_space<semaphore_mem>> -> memref<1x!tpu.dma_semaphore, #tpu.memory_space<semaphore_mem>>
    %125 = tpu.memref_squeeze %124 : memref<1x!tpu.dma_semaphore, #tpu.memory_space<semaphore_mem>> -> memref<!tpu.dma_semaphore, #tpu.memory_space<semaphore_mem>>
    tpu.enqueue_dma source(%122 : memref<1x32xf32, #tpu.memory_space<any>>) target(%123 : memref<1x32xf32, #tpu.memory_space<vmem>>) target_semaphore(%125 : memref<!tpu.dma_semaphore, #tpu.memory_space<semaphore_mem>>)
    %c3_i32_83 = arith.constant 3 : i32
    %c8_i32_84 = arith.constant 8 : i32
    %126 = arith.addi %2, %c8_i32_84 : i32
    %127 = arith.addi %126, %c3_i32_83 : i32
    %128 = arith.index_cast %127 : i32 to index
    %129 = memref.load %arg2[%128] : memref<32xi32, #tpu.memory_space<smem>>
    %c0_i32_85 = arith.constant 0 : i32
    %130 = arith.maxsi %129, %c0_i32_85 : i32
    %c49_i32_86 = arith.constant 49 : i32
    %131 = arith.minsi %130, %c49_i32_86 : i32
    %c8_i32_87 = arith.constant 8 : i32
    %132 = arith.addi %c8_i32_87, %c3_i32_83 : i32
    %c1_i32_88 = arith.constant 1 : i32
    %c0_i32_89 = arith.constant 0 : i32
    %133 = tpu.memref_slice %arg3[%131, %c0_i32_89] : memref<50x32xf32, #tpu.memory_space<any>> -> memref<1x32xf32, #tpu.memory_space<any>>
    %c0_i32_90 = arith.constant 0 : i32
    %134 = tpu.memref_slice %arg9[%132, %c0_i32_90] : memref<16x32xf32, #tpu.memory_space<vmem>> -> memref<1x32xf32, #tpu.memory_space<vmem>>
    %135 = tpu.memref_slice %arg10[%c1_i32_88] : memref<2x!tpu.dma_semaphore, #tpu.memory_space<semaphore_mem>> -> memref<1x!tpu.dma_semaphore, #tpu.memory_space<semaphore_mem>>
    %136 = tpu.memref_squeeze %135 : memref<1x!tpu.dma_semaphore, #tpu.memory_space<semaphore_mem>> -> memref<!tpu.dma_semaphore, #tpu.memory_space<semaphore_mem>>
    tpu.enqueue_dma source(%133 : memref<1x32xf32, #tpu.memory_space<any>>) target(%134 : memref<1x32xf32, #tpu.memory_space<vmem>>) target_semaphore(%136 : memref<!tpu.dma_semaphore, #tpu.memory_space<semaphore_mem>>)
    %c4_i32_91 = arith.constant 4 : i32
    %c8_i32_92 = arith.constant 8 : i32
    %137 = arith.addi %2, %c8_i32_92 : i32
    %138 = arith.addi %137, %c4_i32_91 : i32
    %139 = arith.index_cast %138 : i32 to index
    %140 = memref.load %arg2[%139] : memref<32xi32, #tpu.memory_space<smem>>
    %c0_i32_93 = arith.constant 0 : i32
    %141 = arith.maxsi %140, %c0_i32_93 : i32
    %c49_i32_94 = arith.constant 49 : i32
    %142 = arith.minsi %141, %c49_i32_94 : i32
    %c8_i32_95 = arith.constant 8 : i32
    %143 = arith.addi %c8_i32_95, %c4_i32_91 : i32
    %c1_i32_96 = arith.constant 1 : i32
    %c0_i32_97 = arith.constant 0 : i32
    %144 = tpu.memref_slice %arg3[%142, %c0_i32_97] : memref<50x32xf32, #tpu.memory_space<any>> -> memref<1x32xf32, #tpu.memory_space<any>>
    %c0_i32_98 = arith.constant 0 : i32
    %145 = tpu.memref_slice %arg9[%143, %c0_i32_98] : memref<16x32xf32, #tpu.memory_space<vmem>> -> memref<1x32xf32, #tpu.memory_space<vmem>>
    %146 = tpu.memref_slice %arg10[%c1_i32_96] : memref<2x!tpu.dma_semaphore, #tpu.memory_space<semaphore_mem>> -> memref<1x!tpu.dma_semaphore, #tpu.memory_space<semaphore_mem>>
    %147 = tpu.memref_squeeze %146 : memref<1x!tpu.dma_semaphore, #tpu.memory_space<semaphore_mem>> -> memref<!tpu.dma_semaphore, #tpu.memory_space<semaphore_mem>>
    tpu.enqueue_dma source(%144 : memref<1x32xf32, #tpu.memory_space<any>>) target(%145 : memref<1x32xf32, #tpu.memory_space<vmem>>) target_semaphore(%147 : memref<!tpu.dma_semaphore, #tpu.memory_space<semaphore_mem>>)
    %c5_i32_99 = arith.constant 5 : i32
    %c8_i32_100 = arith.constant 8 : i32
    %148 = arith.addi %2, %c8_i32_100 : i32
    %149 = arith.addi %148, %c5_i32_99 : i32
    %150 = arith.index_cast %149 : i32 to index
    %151 = memref.load %arg2[%150] : memref<32xi32, #tpu.memory_space<smem>>
    %c0_i32_101 = arith.constant 0 : i32
    %152 = arith.maxsi %151, %c0_i32_101 : i32
    %c49_i32_102 = arith.constant 49 : i32
    %153 = arith.minsi %152, %c49_i32_102 : i32
    %c8_i32_103 = arith.constant 8 : i32
    %154 = arith.addi %c8_i32_103, %c5_i32_99 : i32
    %c1_i32_104 = arith.constant 1 : i32
    %c0_i32_105 = arith.constant 0 : i32
    %155 = tpu.memref_slice %arg3[%153, %c0_i32_105] : memref<50x32xf32, #tpu.memory_space<any>> -> memref<1x32xf32, #tpu.memory_space<any>>
    %c0_i32_106 = arith.constant 0 : i32
    %156 = tpu.memref_slice %arg9[%154, %c0_i32_106] : memref<16x32xf32, #tpu.memory_space<vmem>> -> memref<1x32xf32, #tpu.memory_space<vmem>>
    %157 = tpu.memref_slice %arg10[%c1_i32_104] : memref<2x!tpu.dma_semaphore, #tpu.memory_space<semaphore_mem>> -> memref<1x!tpu.dma_semaphore, #tpu.memory_space<semaphore_mem>>
    %158 = tpu.memref_squeeze %157 : memref<1x!tpu.dma_semaphore, #tpu.memory_space<semaphore_mem>> -> memref<!tpu.dma_semaphore, #tpu.memory_space<semaphore_mem>>
    tpu.enqueue_dma source(%155 : memref<1x32xf32, #tpu.memory_space<any>>) target(%156 : memref<1x32xf32, #tpu.memory_space<vmem>>) target_semaphore(%158 : memref<!tpu.dma_semaphore, #tpu.memory_space<semaphore_mem>>)
    %c6_i32_107 = arith.constant 6 : i32
    %c8_i32_108 = arith.constant 8 : i32
    %159 = arith.addi %2, %c8_i32_108 : i32
    %160 = arith.addi %159, %c6_i32_107 : i32
    %161 = arith.index_cast %160 : i32 to index
    %162 = memref.load %arg2[%161] : memref<32xi32, #tpu.memory_space<smem>>
    %c0_i32_109 = arith.constant 0 : i32
    %163 = arith.maxsi %162, %c0_i32_109 : i32
    %c49_i32_110 = arith.constant 49 : i32
    %164 = arith.minsi %163, %c49_i32_110 : i32
    %c8_i32_111 = arith.constant 8 : i32
    %165 = arith.addi %c8_i32_111, %c6_i32_107 : i32
    %c1_i32_112 = arith.constant 1 : i32
    %c0_i32_113 = arith.constant 0 : i32
    %166 = tpu.memref_slice %arg3[%164, %c0_i32_113] : memref<50x32xf32, #tpu.memory_space<any>> -> memref<1x32xf32, #tpu.memory_space<any>>
    %c0_i32_114 = arith.constant 0 : i32
    %167 = tpu.memref_slice %arg9[%165, %c0_i32_114] : memref<16x32xf32, #tpu.memory_space<vmem>> -> memref<1x32xf32, #tpu.memory_space<vmem>>
    %168 = tpu.memref_slice %arg10[%c1_i32_112] : memref<2x!tpu.dma_semaphore, #tpu.memory_space<semaphore_mem>> -> memref<1x!tpu.dma_semaphore, #tpu.memory_space<semaphore_mem>>
    %169 = tpu.memref_squeeze %168 : memref<1x!tpu.dma_semaphore, #tpu.memory_space<semaphore_mem>> -> memref<!tpu.dma_semaphore, #tpu.memory_space<semaphore_mem>>
    tpu.enqueue_dma source(%166 : memref<1x32xf32, #tpu.memory_space<any>>) target(%167 : memref<1x32xf32, #tpu.memory_space<vmem>>) target_semaphore(%169 : memref<!tpu.dma_semaphore, #tpu.memory_space<semaphore_mem>>)
    %c7_i32_115 = arith.constant 7 : i32
    %c8_i32_116 = arith.constant 8 : i32
    %170 = arith.addi %2, %c8_i32_116 : i32
    %171 = arith.addi %170, %c7_i32_115 : i32
    %172 = arith.index_cast %171 : i32 to index
    %173 = memref.load %arg2[%172] : memref<32xi32, #tpu.memory_space<smem>>
    %c0_i32_117 = arith.constant 0 : i32
    %174 = arith.maxsi %173, %c0_i32_117 : i32
    %c49_i32_118 = arith.constant 49 : i32
    %175 = arith.minsi %174, %c49_i32_118 : i32
    %c8_i32_119 = arith.constant 8 : i32
    %176 = arith.addi %c8_i32_119, %c7_i32_115 : i32
    %c1_i32_120 = arith.constant 1 : i32
    %c0_i32_121 = arith.constant 0 : i32
    %177 = tpu.memref_slice %arg3[%175, %c0_i32_121] : memref<50x32xf32, #tpu.memory_space<any>> -> memref<1x32xf32, #tpu.memory_space<any>>
    %c0_i32_122 = arith.constant 0 : i32
    %178 = tpu.memref_slice %arg9[%176, %c0_i32_122] : memref<16x32xf32, #tpu.memory_space<vmem>> -> memref<1x32xf32, #tpu.memory_space<vmem>>
    %179 = tpu.memref_slice %arg10[%c1_i32_120] : memref<2x!tpu.dma_semaphore, #tpu.memory_space<semaphore_mem>> -> memref<1x!tpu.dma_semaphore, #tpu.memory_space<semaphore_mem>>
    %180 = tpu.memref_squeeze %179 : memref<1x!tpu.dma_semaphore, #tpu.memory_space<semaphore_mem>> -> memref<!tpu.dma_semaphore, #tpu.memory_space<semaphore_mem>>
    tpu.enqueue_dma source(%177 : memref<1x32xf32, #tpu.memory_space<any>>) target(%178 : memref<1x32xf32, #tpu.memory_space<vmem>>) target_semaphore(%180 : memref<!tpu.dma_semaphore, #tpu.memory_space<semaphore_mem>>)
    %c8_i32_123 = arith.constant 8 : i32
    %c0_i32_124 = arith.constant 0 : i32
    %c0_i32_125 = arith.constant 0 : i32
    %181 = arith.addi %c0_i32_125, %c0_i32_124 : i32
    %c0_i32_126 = arith.constant 0 : i32
    %c0_i32_127 = arith.constant 0 : i32
    %c0_i32_128 = arith.constant 0 : i32
    %182 = tpu.memref_slice %arg3[%c0_i32_127, %c0_i32_128] : memref<50x32xf32, #tpu.memory_space<any>> -> memref<1x32xf32, #tpu.memory_space<any>>
    %c0_i32_129 = arith.constant 0 : i32
    %183 = tpu.memref_slice %arg9[%181, %c0_i32_129] : memref<16x32xf32, #tpu.memory_space<vmem>> -> memref<1x32xf32, #tpu.memory_space<vmem>>
    %184 = tpu.memref_slice %arg10[%c0_i32_126] : memref<2x!tpu.dma_semaphore, #tpu.memory_space<semaphore_mem>> -> memref<1x!tpu.dma_semaphore, #tpu.memory_space<semaphore_mem>>
    %185 = tpu.memref_squeeze %184 : memref<1x!tpu.dma_semaphore, #tpu.memory_space<semaphore_mem>> -> memref<!tpu.dma_semaphore, #tpu.memory_space<semaphore_mem>>
    tpu.wait_dma2 semaphore(%185 : memref<!tpu.dma_semaphore, #tpu.memory_space<semaphore_mem>>) src(%182 : memref<1x32xf32, #tpu.memory_space<any>>) dst(%183 : memref<1x32xf32, #tpu.memory_space<vmem>>)
    %c1_i32_130 = arith.constant 1 : i32
    %c0_i32_131 = arith.constant 0 : i32
    %186 = arith.addi %c0_i32_131, %c1_i32_130 : i32
    %c0_i32_132 = arith.constant 0 : i32
    %c0_i32_133 = arith.constant 0 : i32
    %c0_i32_134 = arith.constant 0 : i32
    %187 = tpu.memref_slice %arg3[%c0_i32_133, %c0_i32_134] : memref<50x32xf32, #tpu.memory_space<any>> -> memref<1x32xf32, #tpu.memory_space<any>>
    %c0_i32_135 = arith.constant 0 : i32
    %188 = tpu.memref_slice %arg9[%186, %c0_i32_135] : memref<16x32xf32, #tpu.memory_space<vmem>> -> memref<1x32xf32, #tpu.memory_space<vmem>>
    %189 = tpu.memref_slice %arg10[%c0_i32_132] : memref<2x!tpu.dma_semaphore, #tpu.memory_space<semaphore_mem>> -> memref<1x!tpu.dma_semaphore, #tpu.memory_space<semaphore_mem>>
    %190 = tpu.memref_squeeze %189 : memref<1x!tpu.dma_semaphore, #tpu.memory_space<semaphore_mem>> -> memref<!tpu.dma_semaphore, #tpu.memory_space<semaphore_mem>>
    tpu.wait_dma2 semaphore(%190 : memref<!tpu.dma_semaphore, #tpu.memory_space<semaphore_mem>>) src(%187 : memref<1x32xf32, #tpu.memory_space<any>>) dst(%188 : memref<1x32xf32, #tpu.memory_space<vmem>>)
    %c2_i32_136 = arith.constant 2 : i32
    %c0_i32_137 = arith.constant 0 : i32
    %191 = arith.addi %c0_i32_137, %c2_i32_136 : i32
    %c0_i32_138 = arith.constant 0 : i32
    %c0_i32_139 = arith.constant 0 : i32
    %c0_i32_140 = arith.constant 0 : i32
    %192 = tpu.memref_slice %arg3[%c0_i32_139, %c0_i32_140] : memref<50x32xf32, #tpu.memory_space<any>> -> memref<1x32xf32, #tpu.memory_space<any>>
    %c0_i32_141 = arith.constant 0 : i32
    %193 = tpu.memref_slice %arg9[%191, %c0_i32_141] : memref<16x32xf32, #tpu.memory_space<vmem>> -> memref<1x32xf32, #tpu.memory_space<vmem>>
    %194 = tpu.memref_slice %arg10[%c0_i32_138] : memref<2x!tpu.dma_semaphore, #tpu.memory_space<semaphore_mem>> -> memref<1x!tpu.dma_semaphore, #tpu.memory_space<semaphore_mem>>
    %195 = tpu.memref_squeeze %194 : memref<1x!tpu.dma_semaphore, #tpu.memory_space<semaphore_mem>> -> memref<!tpu.dma_semaphore, #tpu.memory_space<semaphore_mem>>
    tpu.wait_dma2 semaphore(%195 : memref<!tpu.dma_semaphore, #tpu.memory_space<semaphore_mem>>) src(%192 : memref<1x32xf32, #tpu.memory_space<any>>) dst(%193 : memref<1x32xf32, #tpu.memory_space<vmem>>)
    %c3_i32_142 = arith.constant 3 : i32
    %c0_i32_143 = arith.constant 0 : i32
    %196 = arith.addi %c0_i32_143, %c3_i32_142 : i32
    %c0_i32_144 = arith.constant 0 : i32
    %c0_i32_145 = arith.constant 0 : i32
    %c0_i32_146 = arith.constant 0 : i32
    %197 = tpu.memref_slice %arg3[%c0_i32_145, %c0_i32_146] : memref<50x32xf32, #tpu.memory_space<any>> -> memref<1x32xf32, #tpu.memory_space<any>>
    %c0_i32_147 = arith.constant 0 : i32
    %198 = tpu.memref_slice %arg9[%196, %c0_i32_147] : memref<16x32xf32, #tpu.memory_space<vmem>> -> memref<1x32xf32, #tpu.memory_space<vmem>>
    %199 = tpu.memref_slice %arg10[%c0_i32_144] : memref<2x!tpu.dma_semaphore, #tpu.memory_space<semaphore_mem>> -> memref<1x!tpu.dma_semaphore, #tpu.memory_space<semaphore_mem>>
    %200 = tpu.memref_squeeze %199 : memref<1x!tpu.dma_semaphore, #tpu.memory_space<semaphore_mem>> -> memref<!tpu.dma_semaphore, #tpu.memory_space<semaphore_mem>>
    tpu.wait_dma2 semaphore(%200 : memref<!tpu.dma_semaphore, #tpu.memory_space<semaphore_mem>>) src(%197 : memref<1x32xf32, #tpu.memory_space<any>>) dst(%198 : memref<1x32xf32, #tpu.memory_space<vmem>>)
    %c4_i32_148 = arith.constant 4 : i32
    %c0_i32_149 = arith.constant 0 : i32
    %201 = arith.addi %c0_i32_149, %c4_i32_148 : i32
    %c0_i32_150 = arith.constant 0 : i32
    %c0_i32_151 = arith.constant 0 : i32
    %c0_i32_152 = arith.constant 0 : i32
    %202 = tpu.memref_slice %arg3[%c0_i32_151, %c0_i32_152] : memref<50x32xf32, #tpu.memory_space<any>> -> memref<1x32xf32, #tpu.memory_space<any>>
    %c0_i32_153 = arith.constant 0 : i32
    %203 = tpu.memref_slice %arg9[%201, %c0_i32_153] : memref<16x32xf32, #tpu.memory_space<vmem>> -> memref<1x32xf32, #tpu.memory_space<vmem>>
    %204 = tpu.memref_slice %arg10[%c0_i32_150] : memref<2x!tpu.dma_semaphore, #tpu.memory_space<semaphore_mem>> -> memref<1x!tpu.dma_semaphore, #tpu.memory_space<semaphore_mem>>
    %205 = tpu.memref_squeeze %204 : memref<1x!tpu.dma_semaphore, #tpu.memory_space<semaphore_mem>> -> memref<!tpu.dma_semaphore, #tpu.memory_space<semaphore_mem>>
    tpu.wait_dma2 semaphore(%205 : memref<!tpu.dma_semaphore, #tpu.memory_space<semaphore_mem>>) src(%202 : memref<1x32xf32, #tpu.memory_space<any>>) dst(%203 : memref<1x32xf32, #tpu.memory_space<vmem>>)
    %c5_i32_154 = arith.constant 5 : i32
    %c0_i32_155 = arith.constant 0 : i32
    %206 = arith.addi %c0_i32_155, %c5_i32_154 : i32
    %c0_i32_156 = arith.constant 0 : i32
    %c0_i32_157 = arith.constant 0 : i32
    %c0_i32_158 = arith.constant 0 : i32
    %207 = tpu.memref_slice %arg3[%c0_i32_157, %c0_i32_158] : memref<50x32xf32, #tpu.memory_space<any>> -> memref<1x32xf32, #tpu.memory_space<any>>
    %c0_i32_159 = arith.constant 0 : i32
    %208 = tpu.memref_slice %arg9[%206, %c0_i32_159] : memref<16x32xf32, #tpu.memory_space<vmem>> -> memref<1x32xf32, #tpu.memory_space<vmem>>
    %209 = tpu.memref_slice %arg10[%c0_i32_156] : memref<2x!tpu.dma_semaphore, #tpu.memory_space<semaphore_mem>> -> memref<1x!tpu.dma_semaphore, #tpu.memory_space<semaphore_mem>>
    %210 = tpu.memref_squeeze %209 : memref<1x!tpu.dma_semaphore, #tpu.memory_space<semaphore_mem>> -> memref<!tpu.dma_semaphore, #tpu.memory_space<semaphore_mem>>
    tpu.wait_dma2 semaphore(%210 : memref<!tpu.dma_semaphore, #tpu.memory_space<semaphore_mem>>) src(%207 : memref<1x32xf32, #tpu.memory_space<any>>) dst(%208 : memref<1x32xf32, #tpu.memory_space<vmem>>)
    %c6_i32_160 = arith.constant 6 : i32
    %c0_i32_161 = arith.constant 0 : i32
    %211 = arith.addi %c0_i32_161, %c6_i32_160 : i32
    %c0_i32_162 = arith.constant 0 : i32
    %c0_i32_163 = arith.constant 0 : i32
    %c0_i32_164 = arith.constant 0 : i32
    %212 = tpu.memref_slice %arg3[%c0_i32_163, %c0_i32_164] : memref<50x32xf32, #tpu.memory_space<any>> -> memref<1x32xf32, #tpu.memory_space<any>>
    %c0_i32_165 = arith.constant 0 : i32
    %213 = tpu.memref_slice %arg9[%211, %c0_i32_165] : memref<16x32xf32, #tpu.memory_space<vmem>> -> memref<1x32xf32, #tpu.memory_space<vmem>>
    %214 = tpu.memref_slice %arg10[%c0_i32_162] : memref<2x!tpu.dma_semaphore, #tpu.memory_space<semaphore_mem>> -> memref<1x!tpu.dma_semaphore, #tpu.memory_space<semaphore_mem>>
    %215 = tpu.memref_squeeze %214 : memref<1x!tpu.dma_semaphore, #tpu.memory_space<semaphore_mem>> -> memref<!tpu.dma_semaphore, #tpu.memory_space<semaphore_mem>>
    tpu.wait_dma2 semaphore(%215 : memref<!tpu.dma_semaphore, #tpu.memory_space<semaphore_mem>>) src(%212 : memref<1x32xf32, #tpu.memory_space<any>>) dst(%213 : memref<1x32xf32, #tpu.memory_space<vmem>>)
    %c7_i32_166 = arith.constant 7 : i32
    %c0_i32_167 = arith.constant 0 : i32
    %216 = arith.addi %c0_i32_167, %c7_i32_166 : i32
    %c0_i32_168 = arith.constant 0 : i32
    %c0_i32_169 = arith.constant 0 : i32
    %c0_i32_170 = arith.constant 0 : i32
    %217 = tpu.memref_slice %arg3[%c0_i32_169, %c0_i32_170] : memref<50x32xf32, #tpu.memory_space<any>> -> memref<1x32xf32, #tpu.memory_space<any>>
    %c0_i32_171 = arith.constant 0 : i32
    %218 = tpu.memref_slice %arg9[%216, %c0_i32_171] : memref<16x32xf32, #tpu.memory_space<vmem>> -> memref<1x32xf32, #tpu.memory_space<vmem>>
    %219 = tpu.memref_slice %arg10[%c0_i32_168] : memref<2x!tpu.dma_semaphore, #tpu.memory_space<semaphore_mem>> -> memref<1x!tpu.dma_semaphore, #tpu.memory_space<semaphore_mem>>
    %220 = tpu.memref_squeeze %219 : memref<1x!tpu.dma_semaphore, #tpu.memory_space<semaphore_mem>> -> memref<!tpu.dma_semaphore, #tpu.memory_space<semaphore_mem>>
    tpu.wait_dma2 semaphore(%220 : memref<!tpu.dma_semaphore, #tpu.memory_space<semaphore_mem>>) src(%217 : memref<1x32xf32, #tpu.memory_space<any>>) dst(%218 : memref<1x32xf32, #tpu.memory_space<vmem>>)
    %c8_i32_172 = arith.constant 8 : i32
    %c0_173 = arith.constant 0 : index
    %c0_174 = arith.constant 0 : index
    %221 = vector.load %arg9[%c0_173, %c0_174] : memref<16x32xf32, #tpu.memory_space<vmem>>, vector<8x32xf32>
    %c0_175 = arith.constant 0 : index
    %c0_176 = arith.constant 0 : index
    %222 = vector.load %arg4[%c0_175, %c0_176] : memref<16x32xf32, #tpu.memory_space<vmem>>, vector<8x32xf32>
    %223 = arith.addf %221, %222 : vector<8x32xf32>
    %c0_177 = arith.constant 0 : index
    %c0_178 = arith.constant 0 : index
    %c0_179 = arith.constant 0 : index
    %224 = vector.load %arg5[%c0_177, %c0_178, %c0_179] : memref<1x16x32xf32, #tpu.memory_space<vmem>>, vector<1x8x32xf32>
    %225 = vector.shape_cast %224 : vector<1x8x32xf32> to vector<8x32xf32>
    %226 = arith.addf %223, %225 : vector<8x32xf32>
    %cst = arith.constant dense<0.000000e+00> : vector<8xf32>
    %227 = vector.multi_reduction <add>, %226, %cst [1] : vector<8x32xf32> to vector<8xf32>
    %228 = vector.shape_cast %227 : vector<8xf32> to vector<8x1xf32>
    %cst_180 = arith.constant 3.200000e+01 : f32
    %229 = vector.broadcast %cst_180 : f32 to vector<8x1xf32>
    %230 = arith.divf %228, %229 : vector<8x1xf32>
    %231 = vector.broadcast %230 : vector<8x1xf32> to vector<8x32xf32>
    %232 = arith.subf %226, %231 : vector<8x32xf32>
    %233 = arith.mulf %232, %232 : vector<8x32xf32>
    %cst_181 = arith.constant dense<0.000000e+00> : vector<8xf32>
    %234 = vector.multi_reduction <add>, %233, %cst_181 [1] : vector<8x32xf32> to vector<8xf32>
    %235 = vector.shape_cast %234 : vector<8xf32> to vector<8x1xf32>
    %cst_182 = arith.constant 3.200000e+01 : f32
    %236 = vector.broadcast %cst_182 : f32 to vector<8x1xf32>
    %237 = arith.divf %235, %236 : vector<8x1xf32>
    %cst_183 = arith.constant 9.99999996E-13 : f32
    %238 = vector.broadcast %cst_183 : f32 to vector<8x1xf32>
    %239 = arith.addf %237, %238 : vector<8x1xf32>
    %240 = math.rsqrt %239 : vector<8x1xf32>
    %241 = vector.broadcast %3 : vector<1x32xf32> to vector<8x32xf32>
    %242 = vector.broadcast %240 : vector<8x1xf32> to vector<8x32xf32>
    %243 = arith.mulf %241, %242 : vector<8x32xf32>
    %244 = arith.mulf %232, %243 : vector<8x32xf32>
    %245 = vector.broadcast %4 : vector<1x32xf32> to vector<8x32xf32>
    %246 = arith.addf %244, %245 : vector<8x32xf32>
    %c0_184 = arith.constant 0 : index
    %c0_185 = arith.constant 0 : index
    %c0_186 = arith.constant 0 : index
    %247 = vector.load %arg8[%c0_184, %c0_185, %c0_186] : memref<1x16x32xf32, #tpu.memory_space<vmem>>, vector<1x8x32xf32>
    %248 = vector.shape_cast %247 : vector<1x8x32xf32> to vector<8x32xf32>
    %249 = vector.shape_cast %246 : vector<8x32xf32> to vector<1x8x32xf32>
    tpu.vector_store %arg8[%c0_184, %c0_185, %c0_186], %249 {strides = array<i32>} : memref<1x16x32xf32, #tpu.memory_space<vmem>>, vector<1x8x32xf32>,
    %c0_i32_187 = arith.constant 0 : i32
    %c8_i32_188 = arith.constant 8 : i32
    %250 = arith.addi %c8_i32_188, %c0_i32_187 : i32
    %c1_i32_189 = arith.constant 1 : i32
    %c0_i32_190 = arith.constant 0 : i32
    %c0_i32_191 = arith.constant 0 : i32
    %251 = tpu.memref_slice %arg3[%c0_i32_190, %c0_i32_191] : memref<50x32xf32, #tpu.memory_space<any>> -> memref<1x32xf32, #tpu.memory_space<any>>
    %c0_i32_192 = arith.constant 0 : i32
    %252 = tpu.memref_slice %arg9[%250, %c0_i32_192] : memref<16x32xf32, #tpu.memory_space<vmem>> -> memref<1x32xf32, #tpu.memory_space<vmem>>
    %253 = tpu.memref_slice %arg10[%c1_i32_189] : memref<2x!tpu.dma_semaphore, #tpu.memory_space<semaphore_mem>> -> memref<1x!tpu.dma_semaphore, #tpu.memory_space<semaphore_mem>>
    %254 = tpu.memref_squeeze %253 : memref<1x!tpu.dma_semaphore, #tpu.memory_space<semaphore_mem>> -> memref<!tpu.dma_semaphore, #tpu.memory_space<semaphore_mem>>
    tpu.wait_dma2 semaphore(%254 : memref<!tpu.dma_semaphore, #tpu.memory_space<semaphore_mem>>) src(%251 : memref<1x32xf32, #tpu.memory_space<any>>) dst(%252 : memref<1x32xf32, #tpu.memory_space<vmem>>)
    %c1_i32_193 = arith.constant 1 : i32
    %c8_i32_194 = arith.constant 8 : i32
    %255 = arith.addi %c8_i32_194, %c1_i32_193 : i32
    %c1_i32_195 = arith.constant 1 : i32
    %c0_i32_196 = arith.constant 0 : i32
    %c0_i32_197 = arith.constant 0 : i32
    %256 = tpu.memref_slice %arg3[%c0_i32_196, %c0_i32_197] : memref<50x32xf32, #tpu.memory_space<any>> -> memref<1x32xf32, #tpu.memory_space<any>>
    %c0_i32_198 = arith.constant 0 : i32
    %257 = tpu.memref_slice %arg9[%255, %c0_i32_198] : memref<16x32xf32, #tpu.memory_space<vmem>> -> memref<1x32xf32, #tpu.memory_space<vmem>>
    %258 = tpu.memref_slice %arg10[%c1_i32_195] : memref<2x!tpu.dma_semaphore, #tpu.memory_space<semaphore_mem>> -> memref<1x!tpu.dma_semaphore, #tpu.memory_space<semaphore_mem>>
    %259 = tpu.memref_squeeze %258 : memref<1x!tpu.dma_semaphore, #tpu.memory_space<semaphore_mem>> -> memref<!tpu.dma_semaphore, #tpu.memory_space<semaphore_mem>>
    tpu.wait_dma2 semaphore(%259 : memref<!tpu.dma_semaphore, #tpu.memory_space<semaphore_mem>>) src(%256 : memref<1x32xf32, #tpu.memory_space<any>>) dst(%257 : memref<1x32xf32, #tpu.memory_space<vmem>>)
    %c2_i32_199 = arith.constant 2 : i32
    %c8_i32_200 = arith.constant 8 : i32
    %260 = arith.addi %c8_i32_200, %c2_i32_199 : i32
    %c1_i32_201 = arith.constant 1 : i32
    %c0_i32_202 = arith.constant 0 : i32
    %c0_i32_203 = arith.constant 0 : i32
    %261 = tpu.memref_slice %arg3[%c0_i32_202, %c0_i32_203] : memref<50x32xf32, #tpu.memory_space<any>> -> memref<1x32xf32, #tpu.memory_space<any>>
    %c0_i32_204 = arith.constant 0 : i32
    %262 = tpu.memref_slice %arg9[%260, %c0_i32_204] : memref<16x32xf32, #tpu.memory_space<vmem>> -> memref<1x32xf32, #tpu.memory_space<vmem>>
    %263 = tpu.memref_slice %arg10[%c1_i32_201] : memref<2x!tpu.dma_semaphore, #tpu.memory_space<semaphore_mem>> -> memref<1x!tpu.dma_semaphore, #tpu.memory_space<semaphore_mem>>
    %264 = tpu.memref_squeeze %263 : memref<1x!tpu.dma_semaphore, #tpu.memory_space<semaphore_mem>> -> memref<!tpu.dma_semaphore, #tpu.memory_space<semaphore_mem>>
    tpu.wait_dma2 semaphore(%264 : memref<!tpu.dma_semaphore, #tpu.memory_space<semaphore_mem>>) src(%261 : memref<1x32xf32, #tpu.memory_space<any>>) dst(%262 : memref<1x32xf32, #tpu.memory_space<vmem>>)
    %c3_i32_205 = arith.constant 3 : i32
    %c8_i32_206 = arith.constant 8 : i32
    %265 = arith.addi %c8_i32_206, %c3_i32_205 : i32
    %c1_i32_207 = arith.constant 1 : i32
    %c0_i32_208 = arith.constant 0 : i32
    %c0_i32_209 = arith.constant 0 : i32
    %266 = tpu.memref_slice %arg3[%c0_i32_208, %c0_i32_209] : memref<50x32xf32, #tpu.memory_space<any>> -> memref<1x32xf32, #tpu.memory_space<any>>
    %c0_i32_210 = arith.constant 0 : i32
    %267 = tpu.memref_slice %arg9[%265, %c0_i32_210] : memref<16x32xf32, #tpu.memory_space<vmem>> -> memref<1x32xf32, #tpu.memory_space<vmem>>
    %268 = tpu.memref_slice %arg10[%c1_i32_207] : memref<2x!tpu.dma_semaphore, #tpu.memory_space<semaphore_mem>> -> memref<1x!tpu.dma_semaphore, #tpu.memory_space<semaphore_mem>>
    %269 = tpu.memref_squeeze %268 : memref<1x!tpu.dma_semaphore, #tpu.memory_space<semaphore_mem>> -> memref<!tpu.dma_semaphore, #tpu.memory_space<semaphore_mem>>
    tpu.wait_dma2 semaphore(%269 : memref<!tpu.dma_semaphore, #tpu.memory_space<semaphore_mem>>) src(%266 : memref<1x32xf32, #tpu.memory_space<any>>) dst(%267 : memref<1x32xf32, #tpu.memory_space<vmem>>)
    %c4_i32_211 = arith.constant 4 : i32
    %c8_i32_212 = arith.constant 8 : i32
    %270 = arith.addi %c8_i32_212, %c4_i32_211 : i32
    %c1_i32_213 = arith.constant 1 : i32
    %c0_i32_214 = arith.constant 0 : i32
    %c0_i32_215 = arith.constant 0 : i32
    %271 = tpu.memref_slice %arg3[%c0_i32_214, %c0_i32_215] : memref<50x32xf32, #tpu.memory_space<any>> -> memref<1x32xf32, #tpu.memory_space<any>>
    %c0_i32_216 = arith.constant 0 : i32
    %272 = tpu.memref_slice %arg9[%270, %c0_i32_216] : memref<16x32xf32, #tpu.memory_space<vmem>> -> memref<1x32xf32, #tpu.memory_space<vmem>>
    %273 = tpu.memref_slice %arg10[%c1_i32_213] : memref<2x!tpu.dma_semaphore, #tpu.memory_space<semaphore_mem>> -> memref<1x!tpu.dma_semaphore, #tpu.memory_space<semaphore_mem>>
    %274 = tpu.memref_squeeze %273 : memref<1x!tpu.dma_semaphore, #tpu.memory_space<semaphore_mem>> -> memref<!tpu.dma_semaphore, #tpu.memory_space<semaphore_mem>>
    tpu.wait_dma2 semaphore(%274 : memref<!tpu.dma_semaphore, #tpu.memory_space<semaphore_mem>>) src(%271 : memref<1x32xf32, #tpu.memory_space<any>>) dst(%272 : memref<1x32xf32, #tpu.memory_space<vmem>>)
    %c5_i32_217 = arith.constant 5 : i32
    %c8_i32_218 = arith.constant 8 : i32
    %275 = arith.addi %c8_i32_218, %c5_i32_217 : i32
    %c1_i32_219 = arith.constant 1 : i32
    %c0_i32_220 = arith.constant 0 : i32
    %c0_i32_221 = arith.constant 0 : i32
    %276 = tpu.memref_slice %arg3[%c0_i32_220, %c0_i32_221] : memref<50x32xf32, #tpu.memory_space<any>> -> memref<1x32xf32, #tpu.memory_space<any>>
    %c0_i32_222 = arith.constant 0 : i32
    %277 = tpu.memref_slice %arg9[%275, %c0_i32_222] : memref<16x32xf32, #tpu.memory_space<vmem>> -> memref<1x32xf32, #tpu.memory_space<vmem>>
    %278 = tpu.memref_slice %arg10[%c1_i32_219] : memref<2x!tpu.dma_semaphore, #tpu.memory_space<semaphore_mem>> -> memref<1x!tpu.dma_semaphore, #tpu.memory_space<semaphore_mem>>
    %279 = tpu.memref_squeeze %278 : memref<1x!tpu.dma_semaphore, #tpu.memory_space<semaphore_mem>> -> memref<!tpu.dma_semaphore, #tpu.memory_space<semaphore_mem>>
    tpu.wait_dma2 semaphore(%279 : memref<!tpu.dma_semaphore, #tpu.memory_space<semaphore_mem>>) src(%276 : memref<1x32xf32, #tpu.memory_space<any>>) dst(%277 : memref<1x32xf32, #tpu.memory_space<vmem>>)
    %c6_i32_223 = arith.constant 6 : i32
    %c8_i32_224 = arith.constant 8 : i32
    %280 = arith.addi %c8_i32_224, %c6_i32_223 : i32
    %c1_i32_225 = arith.constant 1 : i32
    %c0_i32_226 = arith.constant 0 : i32
    %c0_i32_227 = arith.constant 0 : i32
    %281 = tpu.memref_slice %arg3[%c0_i32_226, %c0_i32_227] : memref<50x32xf32, #tpu.memory_space<any>> -> memref<1x32xf32, #tpu.memory_space<any>>
    %c0_i32_228 = arith.constant 0 : i32
    %282 = tpu.memref_slice %arg9[%280, %c0_i32_228] : memref<16x32xf32, #tpu.memory_space<vmem>> -> memref<1x32xf32, #tpu.memory_space<vmem>>
    %283 = tpu.memref_slice %arg10[%c1_i32_225] : memref<2x!tpu.dma_semaphore, #tpu.memory_space<semaphore_mem>> -> memref<1x!tpu.dma_semaphore, #tpu.memory_space<semaphore_mem>>
    %284 = tpu.memref_squeeze %283 : memref<1x!tpu.dma_semaphore, #tpu.memory_space<semaphore_mem>> -> memref<!tpu.dma_semaphore, #tpu.memory_space<semaphore_mem>>
    tpu.wait_dma2 semaphore(%284 : memref<!tpu.dma_semaphore, #tpu.memory_space<semaphore_mem>>) src(%281 : memref<1x32xf32, #tpu.memory_space<any>>) dst(%282 : memref<1x32xf32, #tpu.memory_space<vmem>>)
    %c7_i32_229 = arith.constant 7 : i32
    %c8_i32_230 = arith.constant 8 : i32
    %285 = arith.addi %c8_i32_230, %c7_i32_229 : i32
    %c1_i32_231 = arith.constant 1 : i32
    %c0_i32_232 = arith.constant 0 : i32
    %c0_i32_233 = arith.constant 0 : i32
    %286 = tpu.memref_slice %arg3[%c0_i32_232, %c0_i32_233] : memref<50x32xf32, #tpu.memory_space<any>> -> memref<1x32xf32, #tpu.memory_space<any>>
    %c0_i32_234 = arith.constant 0 : i32
    %287 = tpu.memref_slice %arg9[%285, %c0_i32_234] : memref<16x32xf32, #tpu.memory_space<vmem>> -> memref<1x32xf32, #tpu.memory_space<vmem>>
    %288 = tpu.memref_slice %arg10[%c1_i32_231] : memref<2x!tpu.dma_semaphore, #tpu.memory_space<semaphore_mem>> -> memref<1x!tpu.dma_semaphore, #tpu.memory_space<semaphore_mem>>
    %289 = tpu.memref_squeeze %288 : memref<1x!tpu.dma_semaphore, #tpu.memory_space<semaphore_mem>> -> memref<!tpu.dma_semaphore, #tpu.memory_space<semaphore_mem>>
    tpu.wait_dma2 semaphore(%289 : memref<!tpu.dma_semaphore, #tpu.memory_space<semaphore_mem>>) src(%286 : memref<1x32xf32, #tpu.memory_space<any>>) dst(%287 : memref<1x32xf32, #tpu.memory_space<vmem>>)
    %c8_i32_235 = arith.constant 8 : i32
    %c8 = arith.constant 8 : index
    %c0_236 = arith.constant 0 : index
    %290 = vector.load %arg9[%c8, %c0_236] : memref<16x32xf32, #tpu.memory_space<vmem>>, vector<8x32xf32>
    %c8_237 = arith.constant 8 : index
    %c0_238 = arith.constant 0 : index
    %291 = vector.load %arg4[%c8_237, %c0_238] : memref<16x32xf32, #tpu.memory_space<vmem>>, vector<8x32xf32>
    %292 = arith.addf %290, %291 : vector<8x32xf32>
    %c0_239 = arith.constant 0 : index
    %c8_240 = arith.constant 8 : index
    %c0_241 = arith.constant 0 : index
    %293 = vector.load %arg5[%c0_239, %c8_240, %c0_241] : memref<1x16x32xf32, #tpu.memory_space<vmem>>, vector<1x8x32xf32>
    %294 = vector.shape_cast %293 : vector<1x8x32xf32> to vector<8x32xf32>
    %295 = arith.addf %292, %294 : vector<8x32xf32>
    %cst_242 = arith.constant dense<0.000000e+00> : vector<8xf32>
    %296 = vector.multi_reduction <add>, %295, %cst_242 [1] : vector<8x32xf32> to vector<8xf32>
    %297 = vector.shape_cast %296 : vector<8xf32> to vector<8x1xf32>
    %cst_243 = arith.constant 3.200000e+01 : f32
    %298 = vector.broadcast %cst_243 : f32 to vector<8x1xf32>
    %299 = arith.divf %297, %298 : vector<8x1xf32>
    %300 = vector.broadcast %299 : vector<8x1xf32> to vector<8x32xf32>
    %301 = arith.subf %295, %300 : vector<8x32xf32>
    %302 = arith.mulf %301, %301 : vector<8x32xf32>
    %cst_244 = arith.constant dense<0.000000e+00> : vector<8xf32>
    %303 = vector.multi_reduction <add>, %302, %cst_244 [1] : vector<8x32xf32> to vector<8xf32>
    %304 = vector.shape_cast %303 : vector<8xf32> to vector<8x1xf32>
    %cst_245 = arith.constant 3.200000e+01 : f32
    %305 = vector.broadcast %cst_245 : f32 to vector<8x1xf32>
    %306 = arith.divf %304, %305 : vector<8x1xf32>
    %cst_246 = arith.constant 9.99999996E-13 : f32
    %307 = vector.broadcast %cst_246 : f32 to vector<8x1xf32>
    %308 = arith.addf %306, %307 : vector<8x1xf32>
    %309 = math.rsqrt %308 : vector<8x1xf32>
    %310 = vector.broadcast %3 : vector<1x32xf32> to vector<8x32xf32>
    %311 = vector.broadcast %309 : vector<8x1xf32> to vector<8x32xf32>
    %312 = arith.mulf %310, %311 : vector<8x32xf32>
    %313 = arith.mulf %301, %312 : vector<8x32xf32>
    %314 = vector.broadcast %4 : vector<1x32xf32> to vector<8x32xf32>
    %315 = arith.addf %313, %314 : vector<8x32xf32>
    %c0_247 = arith.constant 0 : index
    %c8_248 = arith.constant 8 : index
    %c0_249 = arith.constant 0 : index
    %316 = vector.load %arg8[%c0_247, %c8_248, %c0_249] : memref<1x16x32xf32, #tpu.memory_space<vmem>>, vector<1x8x32xf32>
    %317 = vector.shape_cast %316 : vector<1x8x32xf32> to vector<8x32xf32>
    %318 = vector.shape_cast %315 : vector<8x32xf32> to vector<1x8x32xf32>
    tpu.vector_store %arg8[%c0_247, %c8_248, %c0_249], %318 {strides = array<i32>} : memref<1x16x32xf32, #tpu.memory_space<vmem>>, vector<1x8x32xf32>,
    return
  }
  func.func @transform_1(%arg0: i32, %arg1: i32, %arg2: memref<32xi32, #tpu.memory_space<smem>>) -> (i32, i32) {
    %c0_i32 = arith.constant 0 : i32
    %c0_i32_0 = arith.constant 0 : i32
    return %arg0, %c0_i32 : i32, i32
  }
  func.func @transform_2(%arg0: i32, %arg1: i32, %arg2: memref<32xi32, #tpu.memory_space<smem>>) -> (i32, i32, i32) {
    %c0_i32 = arith.constant 0 : i32
    %c0_i32_0 = arith.constant 0 : i32
    return %arg1, %arg0, %c0_i32 : i32, i32, i32
  }
  func.func @transform_3(%arg0: i32, %arg1: i32, %arg2: memref<32xi32, #tpu.memory_space<smem>>) -> (i32, i32) {
    %c0_i32 = arith.constant 0 : i32
    %c0_i32_0 = arith.constant 0 : i32
    %c0_i32_1 = arith.constant 0 : i32
    return %c0_i32, %c0_i32_0 : i32, i32
  }
  func.func @transform_4(%arg0: i32, %arg1: i32, %arg2: memref<32xi32, #tpu.memory_space<smem>>) -> (i32, i32) {
    %c0_i32 = arith.constant 0 : i32
    %c0_i32_0 = arith.constant 0 : i32
    %c0_i32_1 = arith.constant 0 : i32
    return %c0_i32, %c0_i32_0 : i32, i32
  }
  func.func @transform_5(%arg0: i32, %arg1: i32, %arg2: memref<32xi32, #tpu.memory_space<smem>>) -> (i32, i32, i32) {
    %c0_i32 = arith.constant 0 : i32
    %c0_i32_0 = arith.constant 0 : i32
    return %arg1, %arg0, %c0_i32 : i32, i32, i32
  }
}

</mosaic_0001>

<bundles_post_ra>
// kernel: tpu_custom_call.1
= control target key start
LH: loop header
LB: loop body
LE: loop exit
PB: predicated region body
PF: predicated region fallthrough
CT: control target
= control target key end

     0   :  { %s2081_s0 = inlined_call_operand.vmem [shape: s32[32], index: 0, kind: input, shape index: {}]   ;;  %s2082_s1 = inlined_call_operand.vmem [shape: f32[50,32], index: 1, kind: input, shape index: {}]   ;;  %s2083_s2 = inlined_call_operand.vmem [shape: f32[32,32], index: 2, kind: input, shape index: {}]   ;;  %s2084_s3 = inlined_call_operand.vmem [shape: f32[2,16,32], index: 3, kind: input, shape index: {}]   ;;  %s2085_s4 = inlined_call_operand.vmem [shape: f32[1,32], index: 4, kind: input, shape index: {}]   ;;  %s2086_s5 = inlined_call_operand.vmem [shape: f32[1,32], index: 5, kind: input, shape index: {}]   ;;  %s2087_s6 = inlined_call_operand.hbm [shape: f32[2,16,32], index: 6, kind: output, shape index: {}]  }
   0x1   :  { %s11_s23 = sshll.u32 %s2081_s0, 4  ;;  %s12_s23 = int_to_ptr.vmem [resolvable:$true] %s11_s23 }
   0x2   :  { %s1723_s24 = scalar_lea.vmem %s12_s23, 16  ;;  %p1728_p1 = scmp.lt.s32.totalorder %s12_s23, %s12_s23 }
   0x3   :  { %p1724_p0 = scmp.ne.s32.totalorder %s12_s23, %s1723_s24  ;;  %p1729_p2 = scmp.lt.s32.totalorder %s1723_s24, %s1723_s24 }
   0x5   :  { %p1730_p3 = por %p1729_p2, %p1728_p1 }
   0x7   :  { %p1731_p4 = pnand %p1730_p3, %p1724_p0 }
   0x9   :  { %1734 = shalt.err (!%p1731_p4)  }
   0xa   :  { %s1819_s25 = smov [#allocation5]  }
   0xb   :  { %14 = dma.vmem_to_smem %s12_s23, 16, %s1819_s25, [#allocation4] }
   0xc   :  { %1785 = dma.done.wait [#allocation4], 16 }
   0xd   :  { %1786 = vsyncadd [#allocation4], 4294967280 }
   0xe   :  { %16 = sfence }
   0xf   :  { %17 = vsyncpa [#allocation7], 0 }
  0x10   :  { %19 = vsyncpa [#allocation7 + $0x1], 0  ;;  %s1861_s26 = smov 0   ;;  %s1863_s27 = smov 0  }
  0x11   :  { %s1865_s0 = smov 0   ;;  %s1867_s28 = smov 0  }
  0x12   :  { %s1869_s29 = smov 0   ;;  %s1871_s30 = smov 0  }
  0x13 LB: > { %s1528_s7 = sadd.s32 4294967295, %s1817_s30   ;;  %s1529_s8 = sadd.s32 4294967294, %s1817_s30   ;;  %s1817_s30 = sphi %s1871_s30, %s25_s30   ;;  %s1813_s29 = sphi %s1869_s29, %s2094_s29   ;;  %s1809_s28 = sphi %s1867_s28, %s2093_s28   ;;  %s1805_s0 = sphi %s1865_s0, %s2092_s0   ;;  %s1801_s27 = sphi %s1863_s27, %s2091_s27   ;;  %s1797_s26 = sphi %s1861_s26, %s2090_s26  }
  0x14   : > { %s34_s9 = sadd.s32 1, %s1813_s29  ;;  %s142_s10 = sadd.s32 1, %s1805_s0 }
  0x15   : > { %p35_p5 = scmp.ge.s32.totalorder %s34_s9, 2  ;;  %p152_p6 = scmp.ne.s32.totalorder %s1805_s0, %s1801_s27 }
  0x16   : > { %p153_p7 = scmp.eq.s32.totalorder %s1528_s7, 1  ;;  %p158_p8 = scmp.ne.s32.totalorder %s1801_s27, %s1797_s26 }
  0x17   : > { %s2096_s9 = smov (%p35_p5, %s34_s9), 0  ;;  %p159_p10 = scmp.eq.s32.totalorder %s1529_s8, 1 }
  0x18   : > { %p1901_p9 = por %p153_p7, %p152_p6  ;;  %s137_s12 = ssub.s32 %s1813_s29, %s2096_s9 }
  0x19   : > { %p1533_p11 = scmp.ge.s32.totalorder %s1817_s30, 1  ;;  %p140_p12 = scmp.eq.s32.totalorder %s137_s12, 0 }
  0x1a   : > { %p1908_p13 = por %p159_p10, %p158_p8  ;;  %p205_p0 = scmp.lt.s32.totalorder %s1817_s30, 3 }
  0x1b   : > { %s1914_s14 = scalar_select %p140_p12, %s1805_s0, %s142_s10  }
  0x1c   : > { %p206_p1 = pnand %p1533_p11, %p205_p0 }
  0x1d   : > { %s237_s15 = sand.u32 (!%p206_p1), 1, %s1801_s27   ;;  %p247_p2 = scmp.lt.s32.totalorder (!%p206_p1), %s1809_s28, 1 }
  0x1e   : > { %209 = sbr.rel (%p206_p1) target bundleno = 901 (0x385), region = 36  ;;  %s1534_s20 = sshll.u32 (!%p206_p1), %s237_s15, 4 }
  0x1f   : > { %s1931_s21 = sshll.u32 (!%p206_p1), %s1809_s28, 4  ;;  %s1943_s17 = scalar_lea.vmem (!%p206_p1), [#allocation6], %s1534_s20 }
  0x20   : > { %s262_s22 = sld [smem:[#allocation5 + %s1931_s21]] (!%p206_p1) }
  0x23   : > { %v1921_v0 = vld [vmem:[%s2085_s4] ss:$0 sm:$0xff]  ;;  %s248_s23 = scalar_select %p247_p2, %s1809_s28, 1 }
  0x24   : > { %v1926_v1 = vld [vmem:[%s2086_s5] ss:$0 sm:$0xff] }
  0x25   : > { %s1627_s24 = sshll.u32 %s248_s23, 4 }
  0x26   : > { %s1938_s8 = scalar_lea.vmem %s2084_s3, %s1627_s24  ;;  %p263_p3 = scmp.gt.s32.totalorder %s262_s22, 0 }
  0x27   : > { %p1538_p4 = scmp.lt.s32.totalorder %s262_s22, 49 }
  0x28   : > { %s2098_s22 = smov (!%p263_p3, %s262_s22), 0 }
  0x29   : > { %s2100_s22 = smov (!%p1538_p4, %s2098_s22), 49 }
  0x2a   : > { %s267_s16 = scalar_lea.vmem %s2082_s1, %s2100_s22 }
  0x2b   : > { %v286_v2 = vld [vmem:[%s267_s16] sm:$0x1] }
  0x2c   : > { %287 = vst [vmem:[#allocation2] sm:$0x1] %v286_v2 }
  0x2d   : > { %313 = vsyncadd [#allocation3], 16  ;;  %s314_s18 = sadd.s32 1, %s1931_s21 }
  0x2e   : > { %s315_s19 = sld [smem:[#allocation5 + %s314_s18]] }
  0x34   : > { %p316_p5 = scmp.gt.s32.totalorder %s315_s19, 0  ;;  %p1543_p6 = scmp.lt.s32.totalorder %s315_s19, 49 }
  0x36   : > { %s2102_s19 = smov (!%p316_p5, %s315_s19), 0 }
  0x37   : > { %s2104_s19 = smov (!%p1543_p6, %s2102_s19), 49 }
  0x38   : > { %s320_s25 = scalar_lea.vmem %s2082_s1, %s2104_s19 }
  0x39   : > { %v340_v3 = vld [vmem:[%s320_s25] sm:$0x1] }
  0x3a   : > { %341 = vst [vmem:[#allocation2 + $0x1] sm:$0x1] %v340_v3 }
  0x3b   : > { %367 = vsyncadd [#allocation3], 16  ;;  %s368_s22 = sadd.s32 2, %s1931_s21 }
  0x3c   : > { %s369_s7 = sld [smem:[#allocation5 + %s368_s22]] }
  0x42   : > { %p370_p7 = scmp.gt.s32.totalorder %s369_s7, 0  ;;  %p1548_p8 = scmp.lt.s32.totalorder %s369_s7, 49 }
  0x44   : > { %s2106_s7 = smov (!%p370_p7, %s369_s7), 0 }
  0x45   : > { %s2108_s7 = smov (!%p1548_p8, %s2106_s7), 49 }
  0x46   : > { %s374_s12 = scalar_lea.vmem %s2082_s1, %s2108_s7 }
  0x47   : > { %v394_v4 = vld [vmem:[%s374_s12] sm:$0x1] }
  0x48   : > { %395 = vst [vmem:[#allocation2 + $0x2] sm:$0x1] %v394_v4 }
  0x49   : > { %421 = vsyncadd [#allocation3], 16  ;;  %s422_s16 = sadd.s32 3, %s1931_s21 }
  0x4a   : > { %s423_s18 = sld [smem:[#allocation5 + %s422_s16]] }
  0x50   : > { %p424_p10 = scmp.gt.s32.totalorder %s423_s18, 0  ;;  %p1553_p11 = scmp.lt.s32.totalorder %s423_s18, 49 }
  0x52   : > { %s2110_s18 = smov (!%p424_p10, %s423_s18), 0 }
  0x53   : > { %s2112_s18 = smov (!%p1553_p11, %s2110_s18), 49 }
  0x54   : > { %s428_s24 = scalar_lea.vmem %s2082_s1, %s2112_s18 }
  0x55   : > { %v448_v5 = vld [vmem:[%s428_s24] sm:$0x1] }
  0x56   : > { %449 = vst [vmem:[#allocation2 + $0x3] sm:$0x1] %v448_v5 }
  0x57   : > { %475 = vsyncadd [#allocation3], 16  ;;  %s476_s25 = sadd.s32 4, %s1931_s21 }
  0x58   : > { %s477_s22 = sld [smem:[#allocation5 + %s476_s25]] }
  0x5e   : > { %p478_p12 = scmp.gt.s32.totalorder %s477_s22, 0  ;;  %p1558_p0 = scmp.lt.s32.totalorder %s477_s22, 49 }
  0x60   : > { %s2114_s22 = smov (!%p478_p12, %s477_s22), 0 }
  0x61   : > { %s2116_s22 = smov (!%p1558_p0, %s2114_s22), 49 }
  0x62   : > { %s482_s10 = scalar_lea.vmem %s2082_s1, %s2116_s22 }
  0x63   : > { %v502_v6 = vld [vmem:[%s482_s10] sm:$0x1] }
  0x64   : > { %503 = vst [vmem:[#allocation2 + $0x4] sm:$0x1] %v502_v6 }
  0x65   : > { %529 = vsyncadd [#allocation3], 16  ;;  %s530_s12 = sadd.s32 5, %s1931_s21 }
  0x66   : > { %s531_s16 = sld [smem:[#allocation5 + %s530_s12]] }
  0x6c   : > { %p532_p1 = scmp.gt.s32.totalorder %s531_s16, 0  ;;  %p1563_p2 = scmp.lt.s32.totalorder %s531_s16, 49 }
  0x6e   : > { %s2118_s16 = smov (!%p532_p1, %s531_s16), 0 }
  0x6f   : > { %s2120_s16 = smov (!%p1563_p2, %s2118_s16), 49 }
  0x70   : > { %s536_s23 = scalar_lea.vmem %s2082_s1, %s2120_s16 }
  0x71   : > { %v556_v7 = vld [vmem:[%s536_s23] sm:$0x1] }
  0x72   : > { %557 = vst [vmem:[#allocation2 + $0x5] sm:$0x1] %v556_v7 }
  0x73   : > { %583 = vsyncadd [#allocation3], 16  ;;  %s584_s24 = sadd.s32 6, %s1931_s21 }
  0x74   : > { %s585_s25 = sld [smem:[#allocation5 + %s584_s24]] }
  0x7a   : > { %p586_p3 = scmp.gt.s32.totalorder %s585_s25, 0  ;;  %p1568_p4 = scmp.lt.s32.totalorder %s585_s25, 49 }
  0x7c   : > { %s2122_s25 = smov (!%p586_p3, %s585_s25), 0 }
  0x7d   : > { %s2124_s25 = smov (!%p1568_p4, %s2122_s25), 49 }
  0x7e   : > { %s590_s20 = scalar_lea.vmem %s2082_s1, %s2124_s25 }
  0x7f   : > { %v610_v8 = vld [vmem:[%s590_s20] sm:$0x1] }
  0x80   : > { %611 = vst [vmem:[#allocation2 + $0x6] sm:$0x1] %v610_v8 }
  0x81   : > { %637 = vsyncadd [#allocation3], 16  ;;  %s638_s10 = sadd.s32 7, %s1931_s21 }
  0x82   : > { %s639_s12 = sld [smem:[#allocation5 + %s638_s10]] }
  0x88   : > { %p640_p5 = scmp.gt.s32.totalorder %s639_s12, 0  ;;  %p1573_p6 = scmp.lt.s32.totalorder %s639_s12, 49 }
  0x8a   : > { %s2126_s12 = smov (!%p640_p5, %s639_s12), 0 }
  0x8b   : > { %s2128_s12 = smov (!%p1573_p6, %s2126_s12), 49 }
  0x8c   : > { %s644_s19 = scalar_lea.vmem %s2082_s1, %s2128_s12 }
  0x8d   : > { %v664_v9 = vld [vmem:[%s644_s19] sm:$0x1] }
  0x8e   : > { %665 = vst [vmem:[#allocation2 + $0x7] sm:$0x1] %v664_v9 }
  0x8f   : > { %691 = vsyncadd [#allocation3], 16  ;;  %s692_s23 = sadd.s32 8, %s1931_s21 }
  0x90   : > { %s693_s24 = sld [smem:[#allocation5 + %s692_s23]] }
  0x96   : > { %p694_p7 = scmp.gt.s32.totalorder %s693_s24, 0  ;;  %p1578_p8 = scmp.lt.s32.totalorder %s693_s24, 49 }
  0x98   : > { %s2130_s24 = smov (!%p694_p7, %s693_s24), 0 }
  0x99   : > { %s2132_s24 = smov (!%p1578_p8, %s2130_s24), 49 }
  0x9a   : > { %s698_s7 = scalar_lea.vmem %s2082_s1, %s2132_s24 }
  0x9b   : > { %v719_v10 = vld [vmem:[%s698_s7] sm:$0x1] }
  0x9c   : > { %720 = vst [vmem:[#allocation2 + $0x8] sm:$0x1] %v719_v10 }
  0x9d   : > { %746 = vsyncadd [#allocation3 + $0x1], 16  ;;  %s747_s20 = sadd.s32 9, %s1931_s21 }
  0x9e   : > { %s748_s10 = sld [smem:[#allocation5 + %s747_s20]] }
  0xa4   : > { %p749_p10 = scmp.gt.s32.totalorder %s748_s10, 0  ;;  %p1583_p11 = scmp.lt.s32.totalorder %s748_s10, 49 }
  0xa6   : > { %s2134_s10 = smov (!%p749_p10, %s748_s10), 0 }
  0xa7   : > { %s2136_s10 = smov (!%p1583_p11, %s2134_s10), 49 }
  0xa8   : > { %s753_s18 = scalar_lea.vmem %s2082_s1, %s2136_s10 }
  0xa9   : > { %v773_v11 = vld [vmem:[%s753_s18] sm:$0x1] }
  0xaa   : > { %774 = vst [vmem:[#allocation2 + $0x9] sm:$0x1] %v773_v11 }
  0xab   : > { %800 = vsyncadd [#allocation3 + $0x1], 16  ;;  %s801_s19 = sadd.s32 10, %s1931_s21 }
  0xac   : > { %s802_s23 = sld [smem:[#allocation5 + %s801_s19]] }
  0xb2   : > { %p803_p12 = scmp.gt.s32.totalorder %s802_s23, 0  ;;  %p1588_p0 = scmp.lt.s32.totalorder %s802_s23, 49 }
  0xb4   : > { %s2138_s23 = smov (!%p803_p12, %s802_s23), 0 }
  0xb5   : > { %s2140_s23 = smov (!%p1588_p0, %s2138_s23), 49 }
  0xb6   : > { %s807_s22 = scalar_lea.vmem %s2082_s1, %s2140_s23 }
  0xb7   : > { %v827_v12 = vld [vmem:[%s807_s22] sm:$0x1] }
  0xb8   : > { %828 = vst [vmem:[#allocation2 + $0xa] sm:$0x1] %v827_v12 }
  0xb9   : > { %854 = vsyncadd [#allocation3 + $0x1], 16  ;;  %s855_s7 = sadd.s32 11, %s1931_s21 }
  0xba   : > { %s856_s20 = sld [smem:[#allocation5 + %s855_s7]] }
  0xc0   : > { %p857_p1 = scmp.gt.s32.totalorder %s856_s20, 0  ;;  %p1593_p2 = scmp.lt.s32.totalorder %s856_s20, 49 }
  0xc2   : > { %s2142_s20 = smov (!%p857_p1, %s856_s20), 0 }
  0xc3   : > { %s2144_s20 = smov (!%p1593_p2, %s2142_s20), 49 }
  0xc4   : > { %s861_s16 = scalar_lea.vmem %s2082_s1, %s2144_s20 }
  0xc5   : > { %v881_v13 = vld [vmem:[%s861_s16] sm:$0x1] }
  0xc6   : > { %882 = vst [vmem:[#allocation2 + $0xb] sm:$0x1] %v881_v13 }
  0xc7   : > { %908 = vsyncadd [#allocation3 + $0x1], 16  ;;  %s909_s18 = sadd.s32 12, %s1931_s21 }
  0xc8   : > { %s910_s19 = sld [smem:[#allocation5 + %s909_s18]] }
  0xce   : > { %p911_p3 = scmp.gt.s32.totalorder %s910_s19, 0  ;;  %p1598_p4 = scmp.lt.s32.totalorder %s910_s19, 49 }
  0xd0   : > { %s2146_s19 = smov (!%p911_p3, %s910_s19), 0 }
  0xd1   : > { %s2148_s19 = smov (!%p1598_p4, %s2146_s19), 49 }
  0xd2   : > { %s915_s25 = scalar_lea.vmem %s2082_s1, %s2148_s19 }
  0xd3   : > { %v935_v14 = vld [vmem:[%s915_s25] sm:$0x1] }
  0xd4   : > { %936 = vst [vmem:[#allocation2 + $0xc] sm:$0x1] %v935_v14 }
  0xd5   : > { %962 = vsyncadd [#allocation3 + $0x1], 16  ;;  %s963_s22 = sadd.s32 13, %s1931_s21 }
  0xd6   : > { %s964_s7 = sld [smem:[#allocation5 + %s963_s22]] }
  0xdc   : > { %p965_p5 = scmp.gt.s32.totalorder %s964_s7, 0  ;;  %p1603_p6 = scmp.lt.s32.totalorder %s964_s7, 49 }
  0xde   : > { %s2150_s7 = smov (!%p965_p5, %s964_s7), 0 }
  0xdf   : > { %s2152_s7 = smov (!%p1603_p6, %s2150_s7), 49 }
  0xe0   : > { %s969_s12 = scalar_lea.vmem %s2082_s1, %s2152_s7 }
  0xe1   : > { %v989_v15 = vld [vmem:[%s969_s12] sm:$0x1] }
  0xe2   : > { %990 = vst [vmem:[#allocation2 + $0xd] sm:$0x1] %v989_v15 }
  0xe3   : > { %1016 = vsyncadd [#allocation3 + $0x1], 16  ;;  %s1017_s16 = sadd.s32 14, %s1931_s21 }
  0xe4   : > { %s1018_s18 = sld [smem:[#allocation5 + %s1017_s16]] }
  0xea   : > { %p1019_p7 = scmp.gt.s32.totalorder %s1018_s18, 0  ;;  %p1608_p8 = scmp.lt.s32.totalorder %s1018_s18, 49 }
  0xec   : > { %s2154_s18 = smov (!%p1019_p7, %s1018_s18), 0 }
  0xed   : > { %s2156_s18 = smov (!%p1608_p8, %s2154_s18), 49 }
  0xee   : > { %s1023_s24 = scalar_lea.vmem %s2082_s1, %s2156_s18 }
  0xef   : > { %v1043_v16 = vld [vmem:[%s1023_s24] sm:$0x1] }
  0xf0   : > { %1044 = vst [vmem:[#allocation2 + $0xe] sm:$0x1] %v1043_v16 }
  0xf1   : > { %1070 = vsyncadd [#allocation3 + $0x1], 16  ;;  %s1071_s25 = sadd.s32 15, %s1931_s21 }
  0xf2   : > { %s1072_s22 = sld [smem:[#allocation5 + %s1071_s25]] }
  0xf8   : > { %p1073_p10 = scmp.gt.s32.totalorder %s1072_s22, 0  ;;  %p1613_p11 = scmp.lt.s32.totalorder %s1072_s22, 49 }
  0xfa   : > { %s2158_s22 = smov (!%p1073_p10, %s1072_s22), 0 }
  0xfb   : > { %s2160_s22 = smov (!%p1613_p11, %s2158_s22), 49 }
  0xfc   : > { %s1077_s10 = scalar_lea.vmem %s2082_s1, %s2160_s22 }
  0xfd   : > { %v1097_v17 = vld [vmem:[%s1077_s10] sm:$0x1] }
  0xfe   : > { %1098 = vst [vmem:[#allocation2 + $0xf] sm:$0x1] %v1097_v17 }
  0xff   : > { %1124 = vsyncadd [#allocation3 + $0x1], 16 }
 0x100   : > { %1787 = dma.done.wait [#allocation3], 128 }
 0x101   : > { %1788 = vsyncadd [#allocation3], 4294967168  ;;  %v1142_v18 = vld [vmem:[#allocation2] sm:$0xff]  ;;  %vm1147_vm0 = vcmask 261120  }
 0x102   : > { %v1143_v19 = vld [vmem:[%s2083_s2] sm:$0xff] }
 0x103   : > { %v1145_v20 = vld [vmem:[%s1938_s8] sm:$0xff]  ;;  %v1144_v21 = vadd.f32 %v1143_v19, %v1142_v18 }
 0x105   : > { %v1146_v22 = vadd.f32 %v1145_v20, %v1144_v21 }
 0x107   : > { %v1148_v23 = vsel %vm1147_vm0, %v1146_v22, 0.0 }
 0x108   : > { %1149 = vadd.xlane.f32.xlu0 %v1148_v23 }
 0x191   : > { %v1150_v24 = vpop.xlane.xlu0 %1149 }
 0x192   : > { %v1152_v25 = vmul.f32 0.03125, %v1150_v24 }
 0x194   : > { %v1153_v26 = vsub.f32 %v1146_v22, %v1152_v25 }
 0x196   : > { %v1154_v27 = vmul.f32 %v1153_v26, %v1153_v26 }
 0x198   : > { %v1155_v28 = vsel %vm1147_vm0, %v1154_v27, 0.0 }
 0x199   : > { %1156 = vadd.xlane.f32.xlu0 %v1155_v28 }
 0x222   : > { %v1157_v29 = vpop.xlane.xlu0 %1156 }
 0x223   : > { %v1158_v30 = vmul.f32 0.03125, %v1157_v29 }
 0x225   : > { %v1159_v31 = vadd.f32 1e-12, %v1158_v30 }
 0x227   : > { %1719 = vrsqrt.f32 %v1159_v31 }
 0x234   : > { %v1720_v32 = vpop.eup %1719 }
 0x235   : > { %v1167_v33 = vmul.f32 %v1720_v32, %v1921_v0 }
 0x237   : > { %v1168_v34 = vmul.f32 %v1167_v33, %v1153_v26 }
 0x239   : > { %v1175_v35 = vadd.f32 %v1926_v1, %v1168_v34 }
 0x23b   : > { %1176 = vst.msk [vmem:[%s1943_s17] sm:$0xff] %vm1147_vm0, %v1175_v35 }
 0x23c   : > { %1789 = dma.done.wait [#allocation3 + $0x1], 128 }
 0x23d   : > { %1790 = vsyncadd [#allocation3 + $0x1], 4294967168  ;;  %v1193_v36 = vld [vmem:[#allocation2 + $0x8] sm:$0xff]  ;;  %s1230_s19 = sshll.u32 %s1943_s17, 4  ;;  %s2036_s22 = scalar_lea.sflag [#allocation7], %s237_s15  ;;  %s2029_s19 = int_to_ptr.vmem [resolvable:$true] %s1230_s19 }
 0x23e   : > { %v1194_v37 = vld [vmem:[%s2083_s2 + $0x8] sm:$0xff]  ;;  %s1820_s7 = smov [#allocation6]  }
 0x23f   : > { %v1196_v38 = vld [vmem:[%s1938_s8 + $0x8] sm:$0xff]  ;;  %v1195_v39 = vadd.f32 %v1194_v37, %v1193_v36  ;;  %s1660_s8 = sshll.u32 %s1809_s28, 8  ;;  %s1735_s28 = scalar_lea.vmem %s2029_s19, 256 }
 0x240   : > { %s2027_s25 = scalar_lea.hbm %s2087_s6, %s1660_s8  ;;  %p1736_p12 = scmp.ne.s32.totalorder %s2029_s19, %s1735_s28 }
 0x241   : > { %v1197_v40 = vadd.f32 %v1196_v38, %v1195_v39  ;;  %s1739_s20 = sshll.u32 %s1820_s7, 4  ;;  %s1740_s20 = int_to_ptr.vmem [resolvable:$false] %s1739_s20 }
 0x242   : > { %p1737_p0 = pnand %p1736_p12, %p1901_p9  ;;  %s1741_s10 = scalar_lea.vmem %s1740_s20, 512 }
 0x243   : > { %v1198_v41 = vsel %vm1147_vm0, %v1197_v40, 0.0  ;;  %p1742_p2 = scmp.lt.s32.totalorder %s2029_s19, %s1740_s20  ;;  %p1743_p3 = scmp.lt.s32.totalorder %s1741_s10, %s1735_s28 }
 0x244   : > { %1199 = vadd.xlane.f32.xlu0 %v1198_v41  ;;  %p1738_p1 = pneg %p1737_p0 }
 0x245   : > { %p1744_p4 = por %p1743_p3, %p1742_p2 }
 0x247   : > { %p1745_p5 = pnand %p1744_p4, %p1738_p1 }
 0x2cd   : > { %v1200_v42 = vpop.xlane.xlu0 %1199 }
 0x2ce   : > { %v1201_v43 = vmul.f32 0.03125, %v1200_v42 }
 0x2d0   : > { %v1202_v44 = vsub.f32 %v1197_v40, %v1201_v43 }
 0x2d2   : > { %v1203_v45 = vmul.f32 %v1202_v44, %v1202_v44 }
 0x2d4   : > { %v1204_v46 = vsel %vm1147_vm0, %v1203_v45, 0.0 }
 0x2d5   : > { %1205 = vadd.xlane.f32.xlu0 %v1204_v46 }
 0x35e   : > { %v1206_v47 = vpop.xlane.xlu0 %1205 }
 0x35f   : > { %v1207_v48 = vmul.f32 0.03125, %v1206_v47 }
 0x361   : > { %v1208_v49 = vadd.f32 1e-12, %v1207_v48 }
 0x363   : > { %1721 = vrsqrt.f32 %v1208_v49 }
 0x370   : > { %v1722_v50 = vpop.eup %1721 }
 0x371   : > { %v1210_v51 = vmul.f32 %v1722_v50, %v1921_v0 }
 0x373   : > { %v1211_v52 = vmul.f32 %v1210_v51, %v1202_v44 }
 0x375   : > { %v1212_v53 = vadd.f32 %v1926_v1, %v1211_v52 }
 0x377   : > { %1213 = vst.msk [vmem:[%s1943_s17 + $0x8] sm:$0xff] %vm1147_vm0, %v1212_v53 }
 0x378   : > { %1748 = shalt.err (!%p1745_p5)
}
 0x379   : > { %s1749_s15 = scalar_lea.hbm %s2027_s25, 256  ;;  %s1753_s16 = scalar_lea.hbm %s2087_s6, 512 }
 0x37a   : > { %p1750_p6 = scmp.ne.s32.totalorder %s2027_s25, %s1749_s15  ;;  %p1754_p10 = scmp.lt.s32.totalorder %s2027_s25, %s2087_s6 }
 0x37b   : > { %p1755_p11 = scmp.lt.s32.totalorder %s1753_s16, %s1749_s15 }
 0x37c   : > { %p1751_p7 = pnand %p1750_p6, %p1901_p9 }
 0x37d   : > { %p1756_p12 = por %p1755_p11, %p1754_p10 }
 0x37e   : > { %p1752_p8 = pneg %p1751_p7 }
 0x380   : > { %p1757_p0 = pnand %p1756_p12, %p1752_p8 }
 0x382   : > { %1760 = shalt.err (!%p1757_p0)
}
 0x383   : > { %s1821_s8 = smov 128   ;;  %s1822_s23 = smov 8  }
 0x384   : > { %1661 = dma.vmem_to_hbm [thread:$0]  (%p1901_p9), %s2029_s19, 256, %s2027_s25, %s2036_s22, %s1821_s8, %s1821_s8, %s1822_s23  }
 0x385 PF: > { %p1667_p1 = scmp.ge.s32.totalorder %s1817_s30, 2  ;;  %s1245_s24 = sand.u32 1, %s1797_s26  }
 0x386   : > { %s1246_s28 = scalar_lea.sflag [#allocation7], %s1245_s24 }
 0x387   : > { %p1664_p2 = pnand %p1667_p1, %p1908_p13 }
 0x389   : > { %p1665_p3 = pneg %p1664_p2 }
 0x38b   : > { %1792 = dma.done.wait (%p1665_p3), %s1246_s28, 256  }
 0x38c   : > { %1794 = vsyncadd (%p1665_p3), %s1246_s28, 4294967040  ;;  %s25_s30 = sadd.s32 1, %s1817_s30   ;;  %s2090_s26 = smov %s1801_s27 }
 0x38d   : > { %p22_p4 = scmp.ge.s32.totalorder %s25_s30, 4   ;;  %s2091_s27 = smov %s1805_s0 }
 0x38e   : > { %s2092_s0 = smov %s1914_s14  ;;  %s2093_s28 = smov %s1813_s29 }
 0x38f   : > { %s2094_s29 = smov %s2096_s9  ;;  %24 = sbr.rel (!%p22_p4) target bundleno = 19 (0x13), region = 747 }
 0x394   :  { %1251 = vsyncpa [#allocation7], 1 }
 0x395   :  { %1253 = vsyncpa [#allocation7 + $0x1], 1 }
 0x396   :  { %1254 = vsyncmov [#allocation3] }
 0x399   :  { %s1255_s11 = vpop.sfrf %1254 }
 0x39a   :  { %p1625_p9 = scmp.ne.s32.totalorder %s1255_s11, 0 }
 0x39c   :  { %1259 = shalt.err (%p1625_p9)  }
 0x39d   :  { %1261 = vsyncmov [#allocation3 + $0x1] }
 0x3a0   :  { %s1262_s13 = vpop.sfrf %1261 }
 0x3a1   :  { %p1626_p13 = scmp.ne.s32.totalorder %s1262_s13, 0 }
 0x3a3   :  { %1266 = shalt.err (%p1626_p13)  }

</bundles_post_ra>
